<compile_context>
chip_gen: v7x
topology: tpu7x:2x2x1
jax: 0.10.0
libtpu: 0.0.40
codegen_flags: <defaults>
</compile_context>

<pallas_src>
import numpy as np
import jax
import jax.numpy as jnp
from jax.experimental import pallas as pl
from jax.experimental.pallas import tpu as pltpu


def _round_up(x, m):
    return ((x + m - 1) // m) * m


def _bilinear_matrix(out_size, in_size):
    """Interp matrix matching F.interpolate(mode='bilinear', align_corners=False)."""
    R = np.zeros((out_size, in_size), np.float32)
    if in_size == 1:
        R[:, 0] = 1.0
        return R
    scale = in_size / out_size
    for d in range(out_size):
        src = (d + 0.5) * scale - 0.5
        if src < 0.0:
            src = 0.0
        i0 = min(int(np.floor(src)), in_size - 1)
        i1 = min(i0 + 1, in_size - 1)
        l1 = src - i0
        R[d, i0] += 1.0 - l1
        R[d, i1] += l1
    return R


# ---------------------------------------------------------------------------
# kernels
# ---------------------------------------------------------------------------
def head_kernel(x_ref, w_ref, b_ref, y_ref):
    """[c1 ; cf] = W_head @ x + b_head on one (nf, T) lane-dense pixel tile."""
    y = jnp.dot(w_ref[...], x_ref[0], preferred_element_type=jnp.float32) + b_ref[...]
    y_ref[0, :, :] = y.astype(y_ref.dtype)


def mid_kernel(c1_ref, cs2_ref, rm2_ref, b2_ref, pc_ref, pr_ref,
               cs3_ref, rm3_ref, b3_ref, rwt_ref, brh_ref, out_ref):
    """conv2(s2) -> maxpool(7,3) -> conv3(p1) -> bilinear for one batch image.

    Activations stay packed as (f*rows, cols): channel-major row blocks in
    sublanes, spatial columns in lanes.  Every spatial selection / stride /
    zero-pad / interpolation is a small precomputed matrix, so the body is
    only 2-D matmuls plus elementwise max/add.
    """
    c1 = c1_ref[0]                                                 # (f*H, W)

    # ---- conv2: 3x3, stride 2, valid (3 col-select + 3 row-mix matmuls) --
    out2 = b2_ref[...]                                             # (f*h2, 1)
    for kw in range(3):
        t = jnp.dot(c1, cs2_ref[kw], preferred_element_type=jnp.float32)
        out2 = out2 + jnp.dot(rm2_ref[kw], t, preferred_element_type=jnp.float32)

    # ---- 7x7 / stride-3 max pool (separable: 7 col picks, 7 row picks) ---
    cm = jnp.dot(out2, pc_ref[0], preferred_element_type=jnp.float32)
    for k in range(1, 7):
        cm = jnp.maximum(cm, jnp.dot(out2, pc_ref[k],
                                     preferred_element_type=jnp.float32))
    vm = jnp.dot(pr_ref[0], cm, preferred_element_type=jnp.float32)
    for k in range(1, 7):
        vm = jnp.maximum(vm, jnp.dot(pr_ref[k], cm,
                                     preferred_element_type=jnp.float32))

    # ---- conv3: 3x3, stride 1, zero pad 1 --------------------------------
    out3 = b3_ref[...]                                             # (f*h3, 1)
    for kw in range(3):
        t = jnp.dot(vm, cs3_ref[kw], preferred_element_type=jnp.float32)
        out3 = out3 + jnp.dot(rm3_ref[kw], t, preferred_element_type=jnp.float32)

    # ---- bilinear upsample to (H, W): Rw on the right, block-diag Rh left
    a = jnp.dot(out3, rwt_ref[...], preferred_element_type=jnp.float32)
    up = jnp.dot(brh_ref[...], a, preferred_element_type=jnp.float32)
    out_ref[0, :, :] = up.astype(out_ref.dtype)


def tail_kernel(x_ref, cf_ref, c3u_ref, w4_ref, b4_ref, o_ref):
    """out = x * sigmoid(W4 @ (c3_up + cf) + b4) on one (nf, T) pixel tile."""
    s = c3u_ref[0] + cf_ref[0]
    c4 = jnp.dot(w4_ref[...], s, preferred_element_type=jnp.float32) + b4_ref[...]
    gate = pl.reciprocal(1.0 + jnp.exp(-c4))        # exact; exp goes to the EUP
    o_ref[0, :, :] = (x_ref[0] * gate).astype(o_ref.dtype)


# ---------------------------------------------------------------------------
# wrapper
# ---------------------------------------------------------------------------
def _const_spec(arr):
    nd = arr.ndim
    return pl.BlockSpec(arr.shape, lambda n, _nd=nd: (0,) * _nd)


def _mid_operator_mats(w2, b2, w3, b3, f, H, W):
    """Small operator matrices that drive the fused mid kernel."""
    h2 = (H - 3) // 2 + 1
    w2s = (W - 3) // 2 + 1
    assert h2 >= 7 and w2s >= 7, "spatial size too small for the 7x7/3 max-pool"
    h3 = (h2 - 7) // 3 + 1
    w3s = (w2s - 7) // 3 + 1

    # --- static 0/1 structure matrices (numpy -> constants in the jaxpr) ---
    cs2 = np.zeros((3, W, w2s), np.float32)             # conv2 stride-2 col picks
    for kw in range(3):
        for j in range(w2s):
            cs2[kw, 2 * j + kw, j] = 1.0
    p2 = np.zeros((3, h2, H), np.float32)                # h == 2*i + kh
    for kh in range(3):
        for i in range(h2):
            p2[kh, i, 2 * i + kh] = 1.0
    pc = np.zeros((7, w2s, w3s), np.float32)             # pool column picks
    for k in range(7):
        for j in range(w3s):
            pc[k, 3 * j + k, j] = 1.0
    pr = np.zeros((7, f * h3, f * h2), np.float32)       # pool row picks (blk-diag)
    for k in range(7):
        for c in range(f):
            for i in range(h3):
                pr[k, c * h3 + i, c * h2 + 3 * i + k] = 1.0
    cs3 = np.zeros((3, w3s, w3s), np.float32)            # conv3 col picks (pad 1)
    for kw in range(3):
        for j in range(w3s):
            src = j - 1 + kw
            if 0 <= src < w3s:
                cs3[kw, src, j] = 1.0
    p3 = np.zeros((3, h3, h3), np.float32)               # h == i - 1 + kh (pad 1)
    for kh in range(3):
        for i in range(h3):
            h = i - 1 + kh
            if 0 <= h < h3:
                p3[kh, i, h] = 1.0
    rwt = _bilinear_matrix(W, w3s).T.copy()              # (w3, W)
    rh = _bilinear_matrix(H, h3)                         # (H, h3)
    brh = np.zeros((f * H, f * h3), np.float32)          # block-diag Rh
    for c in range(f):
        brh[c * H:(c + 1) * H, c * h3:(c + 1) * h3] = rh

    # --- weight-dependent row-mix matrices (jnp -> wrapper stays jittable) -
    hp = jax.lax.Precision.HIGHEST
    rm2 = jnp.einsum('ocak,aih->koich', w2, p2,
                     precision=hp).reshape(3, f * h2, f * H)
    rm3 = jnp.einsum('ocak,aih->koich', w3, p3,
                     precision=hp).reshape(3, f * h3, f * h3)
    b2r = jnp.repeat(b2, h2).reshape(f * h2, 1)
    b3r = jnp.repeat(b3, h3).reshape(f * h3, 1)
    return [jnp.asarray(cs2), rm2, b2r, jnp.asarray(pc), jnp.asarray(pr),
            jnp.asarray(cs3), rm3, b3r, jnp.asarray(rwt), jnp.asarray(brh)]


def esa_forward_pallas(x, params, max_tile=2048):
    N, nf, H, W = x.shape
    f = params['w1'].shape[0]
    HW = H * W
    hp = jax.lax.Precision.HIGHEST

    # fold conv_f into conv1:  cf = Wf@(W1@x+b1)+bf = (Wf@W1)@x + (Wf@b1+bf)
    W1 = params['w1'][:, :, 0, 0]
    Wf = params['wf'][:, :, 0, 0]
    b1 = params['b1']
    bf = params['bf']
    w_head = jnp.concatenate([W1, jnp.dot(Wf, W1, precision=hp)], axis=0)
    b_head = jnp.concatenate([b1, jnp.dot(Wf, b1, precision=hp) + bf]).reshape(2 * f, 1)
    w4 = params['w4'][:, :, 0, 0]
    b4 = params['b4'].reshape(nf, 1)

    # lane tiling over the flattened pixel index (no NCHW transposes anywhere)
    if HW <= max_tile:
        tile, hwp = HW, HW
    else:
        tile = max_tile
        hwp = _round_up(HW, tile)
    nt = hwp // tile
    x3 = x.reshape(N, nf, HW)
    xp = x3 if hwp == HW else jnp.pad(x3, ((0, 0), (0, 0), (0, hwp - HW)))

    par2 = pltpu.CompilerParams(dimension_semantics=("parallel", "parallel"))
    par1 = pltpu.CompilerParams(dimension_semantics=("parallel",))

    # ---- head: conv1 + conv_f as one stacked (2f, T) matmul per tile ------
    slab = pl.pallas_call(
        head_kernel,
        grid=(N, nt),
        in_specs=[pl.BlockSpec((1, nf, tile), lambda n, t: (n, 0, t)),
                  pl.BlockSpec((2 * f, nf), lambda n, t: (0, 0)),
                  pl.BlockSpec((2 * f, 1), lambda n, t: (0, 0))],
        out_specs=pl.BlockSpec((1, 2 * f, tile), lambda n, t: (n, 0, t)),
        out_shape=jax.ShapeDtypeStruct((N, 2 * f, hwp), x.dtype),
        compiler_params=par2,
    )(xp, w_head, b_head)

    c1 = slab[:, :f, :HW].reshape(N, f * H, W)   # packed (channel*row, col)
    cf = slab[:, f:, :]                          # (N, f, hwp)

    # ---- mid: conv2 -> maxpool(7,3) -> conv3 -> bilinear, fully fused -----
    consts = _mid_operator_mats(params['w2'], params['b2'],
                                params['w3'], params['b3'], f, H, W)
    c3u = pl.pallas_call(
        mid_kernel,
        grid=(N,),
        in_specs=[pl.BlockSpec((1, f * H, W), lambda n: (n, 0, 0))]
                 + [_const_spec(a) for a in consts],
        out_specs=pl.BlockSpec((1, f * H, W), lambda n: (n, 0, 0)),
        out_shape=jax.ShapeDtypeStruct((N, f * H, W), x.dtype),
        compiler_params=par1,
    )(c1, *consts)
    c3u = c3u.reshape(N, f, HW)
    if hwp != HW:
        c3u = jnp.pad(c3u, ((0, 0), (0, 0), (0, hwp - HW)))

    # ---- tail: conv4(c3_up + cf) -> sigmoid -> x * mask -------------------
    out = pl.pallas_call(
        tail_kernel,
        grid=(N, nt),
        in_specs=[pl.BlockSpec((1, nf, tile), lambda n, t: (n, 0, t)),
                  pl.BlockSpec((1, f, tile), lambda n, t: (n, 0, t)),
                  pl.BlockSpec((1, f, tile), lambda n, t: (n, 0, t)),
                  pl.BlockSpec((nf, f), lambda n, t: (0, 0)),
                  pl.BlockSpec((nf, 1), lambda n, t: (0, 0))],
        out_specs=pl.BlockSpec((1, nf, tile), lambda n, t: (n, 0, t)),
        out_shape=jax.ShapeDtypeStruct((N, nf, hwp), x.dtype),
        compiler_params=par2,
    )(xp, cf, c3u, w4, b4)
    if hwp != HW:
        out = out[:, :, :HW]
    return out.reshape(N, nf, H, W)


# ---------------------------------------------------------------------------
# Pure-JAX reference (test harness only)
# ---------------------------------------------------------------------------
def esa_forward_ref(x, params):
    def conv(xx, w, b, stride=1, padding=0):
        out = jax.lax.conv_general_dilated(
            xx, w, window_strides=(stride, stride),
            padding=[(padding, padding), (padding, padding)],
            dimension_numbers=('NCHW', 'OIHW', 'NCHW'),
            precision=jax.lax.Precision.HIGHEST)
        return out + b[None, :, None, None]

    c1_ = conv(x, params['w1'], params['b1'])
    c1 = conv(c1_, params['w2'], params['b2'], stride=2, padding=0)
    v_max = jax.lax.reduce_window(
        c1, -jnp.inf, jax.lax.max,
        window_dimensions=(1, 1, 7, 7), window_strides=(1, 1, 3, 3),
        padding='VALID')
    c3 = conv(v_max, params['w3'], params['b3'], padding=1)
    H, W = x.shape[2], x.shape[3]
    Rh = jnp.asarray(_bilinear_matrix(H, c3.shape[2]))
    Rw = jnp.asarray(_bilinear_matrix(W, c3.shape[3]))
    c3_up = jnp.einsum('Hh,nchw,Ww->ncHW', Rh, c3, Rw, precision='highest')
    cf = conv(c1_, params['wf'], params['bf'])
    c4 = conv(c3_up + cf, params['w4'], params['b4'])
    return x * jax.nn.sigmoid(c4)


# ---------------------------------------------------------------------------
if __name__ == "__main__":
    key = jax.random.PRNGKey(0)
    N, n_feats, H, W = 2, 8, 24, 24
    esa_channels = 4
    ks = jax.random.split(key, 11)
    params = {
        'w1': jax.random.normal(ks[0], (esa_channels, n_feats, 1, 1), jnp.float32) * 0.2,
        'b1': jax.random.normal(ks[1], (esa_channels,), jnp.float32) * 0.05,
        'wf': jax.random.normal(ks[2], (esa_channels, esa_channels, 1, 1), jnp.float32) * 0.2,
        'bf': jax.random.normal(ks[3], (esa_channels,), jnp.float32) * 0.05,
        'w2': jax.random.normal(ks[4], (esa_channels, esa_channels, 3, 3), jnp.float32) * 0.2,
        'b2': jax.random.normal(ks[5], (esa_channels,), jnp.float32) * 0.05,
        'w3': jax.random.normal(ks[6], (esa_channels, esa_channels, 3, 3), jnp.float32) * 0.2,
        'b3': jax.random.normal(ks[7], (esa_channels,), jnp.float32) * 0.05,
        'w4': jax.random.normal(ks[8], (n_feats, esa_channels, 1, 1), jnp.float32) * 0.2,
        'b4': jax.random.normal(ks[9], (n_feats,), jnp.float32) * 0.05,
    }
    x = jax.random.normal(ks[10], (N, n_feats, H, W), jnp.float32)

    fwd = jax.jit(esa_forward_pallas)
    out = jax.block_until_ready(fwd(x, params))
    ref = jax.block_until_ready(esa_forward_ref(x, params))

    assert out.shape == x.shape, (out.shape, x.shape)
    err = float(jnp.max(jnp.abs(out - ref)))
    assert err < 1e-3, f"max abs err {err}"
    print("KERNEL_OK")
</pallas_src>

<mosaic_0001>
module attributes {stable_mosaic.version = 11 : i64} {
  func.func @head_kernel(%arg0: i32, %arg1: i32, %arg2: memref<1x8x576xf32, #tpu.memory_space<vmem>>, %arg3: memref<8x8xf32, #tpu.memory_space<vmem>>, %arg4: memref<8x1xf32, #tpu.memory_space<vmem>>, %arg5: memref<1x8x576xf32, #tpu.memory_space<vmem>>) attributes {dimension_semantics = [#tpu.dimension_semantics<parallel>, #tpu.dimension_semantics<parallel>], iteration_bounds = array<i64: 2, 1>, scalar_prefetch = 0 : i64, scratch_operands = 0 : i64, tpu.core_type = #tpu.core_type<tc>, window_params = [{transform_indices = @transform_0, window_bounds = array<i64: 1, 8, 576>}, {pipeline_mode = #tpu.pipeline_mode<synchronous>, transform_indices = @transform_1, window_bounds = array<i64: 8, 8>}, {pipeline_mode = #tpu.pipeline_mode<synchronous>, transform_indices = @transform_2, window_bounds = array<i64: 8, 1>}, {transform_indices = @transform_3, window_bounds = array<i64: 1, 8, 576>}]} {
    %c0 = arith.constant 0 : index
    %c0_0 = arith.constant 0 : index
    %0 = vector.load %arg3[%c0, %c0_0] : memref<8x8xf32, #tpu.memory_space<vmem>>, vector<8x8xf32>
    %c0_1 = arith.constant 0 : index
    %c0_2 = arith.constant 0 : index
    %c0_3 = arith.constant 0 : index
    %1 = vector.load %arg2[%c0_1, %c0_2, %c0_3] : memref<1x8x576xf32, #tpu.memory_space<vmem>>, vector<1x8x576xf32>
    %2 = vector.shape_cast %1 : vector<1x8x576xf32> to vector<8x576xf32>
    %cst = arith.constant dense<0.000000e+00> : vector<8x576xf32>
    %3 = tpu.matmul %0, %2, %cst {dimension_numbers = #tpu.dot_dimension_numbers<[1], [0], [0], [1], [0, 0, 1, 1], [], []>} : vector<8x8xf32>, vector<8x576xf32>, vector<8x576xf32> -> vector<8x576xf32>
    %c0_4 = arith.constant 0 : index
    %c0_5 = arith.constant 0 : index
    %4 = vector.load %arg4[%c0_4, %c0_5] : memref<8x1xf32, #tpu.memory_space<vmem>>, vector<8x1xf32>
    %5 = vector.broadcast %4 : vector<8x1xf32> to vector<8x576xf32>
    %6 = arith.addf %3, %5 : vector<8x576xf32>
    %c0_6 = arith.constant 0 : index
    %c0_7 = arith.constant 0 : index
    %c0_8 = arith.constant 0 : index
    %7 = vector.load %arg5[%c0_6, %c0_7, %c0_8] : memref<1x8x576xf32, #tpu.memory_space<vmem>>, vector<1x8x576xf32>
    %8 = vector.shape_cast %7 : vector<1x8x576xf32> to vector<8x576xf32>
    %9 = vector.shape_cast %6 : vector<8x576xf32> to vector<1x8x576xf32>
    tpu.vector_store %arg5[%c0_6, %c0_7, %c0_8], %9 {strides = array<i32>} : memref<1x8x576xf32, #tpu.memory_space<vmem>>, vector<1x8x576xf32>,
    return
  }
  func.func @transform_0(%arg0: i32, %arg1: i32) -> (i32, i32, i32) {
    %c0_i32 = arith.constant 0 : i32
    %c0_i32_0 = arith.constant 0 : i32
    return %arg0, %c0_i32, %arg1 : i32, i32, i32
  }
  func.func @transform_1(%arg0: i32, %arg1: i32) -> (i32, i32) {
    %c0_i32 = arith.constant 0 : i32
    %c0_i32_0 = arith.constant 0 : i32
    %c0_i32_1 = arith.constant 0 : i32
    return %c0_i32, %c0_i32_0 : i32, i32
  }
  func.func @transform_2(%arg0: i32, %arg1: i32) -> (i32, i32) {
    %c0_i32 = arith.constant 0 : i32
    %c0_i32_0 = arith.constant 0 : i32
    %c0_i32_1 = arith.constant 0 : i32
    return %c0_i32, %c0_i32_0 : i32, i32
  }
  func.func @transform_3(%arg0: i32, %arg1: i32) -> (i32, i32, i32) {
    %c0_i32 = arith.constant 0 : i32
    %c0_i32_0 = arith.constant 0 : i32
    return %arg0, %c0_i32, %arg1 : i32, i32, i32
  }
}

module attributes {stable_mosaic.version = 11 : i64} {
  func.func @mid_kernel(%arg0: i32, %arg1: memref<1x96x24xf32, #tpu.memory_space<vmem>>, %arg2: memref<3x24x11xf32, #tpu.memory_space<vmem>>, %arg3: memref<3x44x96xf32, #tpu.memory_space<vmem>>, %arg4: memref<44x1xf32, #tpu.memory_space<vmem>>, %arg5: memref<7x11x2xf32, #tpu.memory_space<vmem>>, %arg6: memref<7x8x44xf32, #tpu.memory_space<vmem>>, %arg7: memref<3x2x2xf32, #tpu.memory_space<vmem>>, %arg8: memref<3x8x8xf32, #tpu.memory_space<vmem>>, %arg9: memref<8x1xf32, #tpu.memory_space<vmem>>, %arg10: memref<2x24xf32, #tpu.memory_space<vmem>>, %arg11: memref<96x8xf32, #tpu.memory_space<vmem>>, %arg12: memref<1x96x24xf32, #tpu.memory_space<vmem>>) attributes {dimension_semantics = [#tpu.dimension_semantics<parallel>], iteration_bounds = array<i64: 2>, scalar_prefetch = 0 : i64, scratch_operands = 0 : i64, tpu.core_type = #tpu.core_type<tc>, window_params = [{transform_indices = @transform_0, window_bounds = array<i64: 1, 96, 24>}, {pipeline_mode = #tpu.pipeline_mode<synchronous>, transform_indices = @transform_1, window_bounds = array<i64: 3, 24, 11>}, {pipeline_mode = #tpu.pipeline_mode<synchronous>, transform_indices = @transform_2, window_bounds = array<i64: 3, 44, 96>}, {pipeline_mode = #tpu.pipeline_mode<synchronous>, transform_indices = @transform_3, window_bounds = array<i64: 44, 1>}, {pipeline_mode = #tpu.pipeline_mode<synchronous>, transform_indices = @transform_4, window_bounds = array<i64: 7, 11, 2>}, {pipeline_mode = #tpu.pipeline_mode<synchronous>, transform_indices = @transform_5, window_bounds = array<i64: 7, 8, 44>}, {pipeline_mode = #tpu.pipeline_mode<synchronous>, transform_indices = @transform_6, window_bounds = array<i64: 3, 2, 2>}, {pipeline_mode = #tpu.pipeline_mode<synchronous>, transform_indices = @transform_7, window_bounds = array<i64: 3, 8, 8>}, {pipeline_mode = #tpu.pipeline_mode<synchronous>, transform_indices = @transform_8, window_bounds = array<i64: 8, 1>}, {pipeline_mode = #tpu.pipeline_mode<synchronous>, transform_indices = @transform_9, window_bounds = array<i64: 2, 24>}, {pipeline_mode = #tpu.pipeline_mode<synchronous>, transform_indices = @transform_10, window_bounds = array<i64: 96, 8>}, {transform_indices = @transform_11, window_bounds = array<i64: 1, 96, 24>}]} {
    %c0 = arith.constant 0 : index
    %c0_0 = arith.constant 0 : index
    %c0_1 = arith.constant 0 : index
    %0 = vector.load %arg1[%c0, %c0_0, %c0_1] : memref<1x96x24xf32, #tpu.memory_space<vmem>>, vector<1x96x24xf32>
    %1 = vector.shape_cast %0 : vector<1x96x24xf32> to vector<96x24xf32>
    %c0_2 = arith.constant 0 : index
    %c0_3 = arith.constant 0 : index
    %2 = vector.load %arg4[%c0_2, %c0_3] : memref<44x1xf32, #tpu.memory_space<vmem>>, vector<44x1xf32>
    %c0_4 = arith.constant 0 : index
    %c0_5 = arith.constant 0 : index
    %c0_6 = arith.constant 0 : index
    %3 = vector.load %arg2[%c0_4, %c0_5, %c0_6] : memref<3x24x11xf32, #tpu.memory_space<vmem>>, vector<1x24x11xf32>
    %4 = vector.shape_cast %3 : vector<1x24x11xf32> to vector<24x11xf32>
    %cst = arith.constant dense<0.000000e+00> : vector<96x11xf32>
    %5 = tpu.matmul %1, %4, %cst {dimension_numbers = #tpu.dot_dimension_numbers<[1], [0], [0], [1], [0, 0, 1, 1], [], []>} : vector<96x24xf32>, vector<24x11xf32>, vector<96x11xf32> -> vector<96x11xf32>
    %c0_7 = arith.constant 0 : index
    %c0_8 = arith.constant 0 : index
    %c0_9 = arith.constant 0 : index
    %6 = vector.load %arg3[%c0_7, %c0_8, %c0_9] : memref<3x44x96xf32, #tpu.memory_space<vmem>>, vector<1x44x96xf32>
    %7 = vector.shape_cast %6 : vector<1x44x96xf32> to vector<44x96xf32>
    %cst_10 = arith.constant dense<0.000000e+00> : vector<44x11xf32>
    %8 = tpu.matmul %7, %5, %cst_10 {dimension_numbers = #tpu.dot_dimension_numbers<[1], [0], [0], [1], [0, 0, 1, 1], [], []>} : vector<44x96xf32>, vector<96x11xf32>, vector<44x11xf32> -> vector<44x11xf32>
    %9 = vector.broadcast %2 : vector<44x1xf32> to vector<44x11xf32>
    %10 = arith.addf %9, %8 : vector<44x11xf32>
    %c1 = arith.constant 1 : index
    %c0_11 = arith.constant 0 : index
    %c0_12 = arith.constant 0 : index
    %11 = vector.load %arg2[%c1, %c0_11, %c0_12] : memref<3x24x11xf32, #tpu.memory_space<vmem>>, vector<1x24x11xf32>
    %12 = vector.shape_cast %11 : vector<1x24x11xf32> to vector<24x11xf32>
    %cst_13 = arith.constant dense<0.000000e+00> : vector<96x11xf32>
    %13 = tpu.matmul %1, %12, %cst_13 {dimension_numbers = #tpu.dot_dimension_numbers<[1], [0], [0], [1], [0, 0, 1, 1], [], []>} : vector<96x24xf32>, vector<24x11xf32>, vector<96x11xf32> -> vector<96x11xf32>
    %c1_14 = arith.constant 1 : index
    %c0_15 = arith.constant 0 : index
    %c0_16 = arith.constant 0 : index
    %14 = vector.load %arg3[%c1_14, %c0_15, %c0_16] : memref<3x44x96xf32, #tpu.memory_space<vmem>>, vector<1x44x96xf32>
    %15 = vector.shape_cast %14 : vector<1x44x96xf32> to vector<44x96xf32>
    %cst_17 = arith.constant dense<0.000000e+00> : vector<44x11xf32>
    %16 = tpu.matmul %15, %13, %cst_17 {dimension_numbers = #tpu.dot_dimension_numbers<[1], [0], [0], [1], [0, 0, 1, 1], [], []>} : vector<44x96xf32>, vector<96x11xf32>, vector<44x11xf32> -> vector<44x11xf32>
    %17 = arith.addf %10, %16 : vector<44x11xf32>
    %c2 = arith.constant 2 : index
    %c0_18 = arith.constant 0 : index
    %c0_19 = arith.constant 0 : index
    %18 = vector.load %arg2[%c2, %c0_18, %c0_19] : memref<3x24x11xf32, #tpu.memory_space<vmem>>, vector<1x24x11xf32>
    %19 = vector.shape_cast %18 : vector<1x24x11xf32> to vector<24x11xf32>
    %cst_20 = arith.constant dense<0.000000e+00> : vector<96x11xf32>
    %20 = tpu.matmul %1, %19, %cst_20 {dimension_numbers = #tpu.dot_dimension_numbers<[1], [0], [0], [1], [0, 0, 1, 1], [], []>} : vector<96x24xf32>, vector<24x11xf32>, vector<96x11xf32> -> vector<96x11xf32>
    %c2_21 = arith.constant 2 : index
    %c0_22 = arith.constant 0 : index
    %c0_23 = arith.constant 0 : index
    %21 = vector.load %arg3[%c2_21, %c0_22, %c0_23] : memref<3x44x96xf32, #tpu.memory_space<vmem>>, vector<1x44x96xf32>
    %22 = vector.shape_cast %21 : vector<1x44x96xf32> to vector<44x96xf32>
    %cst_24 = arith.constant dense<0.000000e+00> : vector<44x11xf32>
    %23 = tpu.matmul %22, %20, %cst_24 {dimension_numbers = #tpu.dot_dimension_numbers<[1], [0], [0], [1], [0, 0, 1, 1], [], []>} : vector<44x96xf32>, vector<96x11xf32>, vector<44x11xf32> -> vector<44x11xf32>
    %24 = arith.addf %17, %23 : vector<44x11xf32>
    %c0_25 = arith.constant 0 : index
    %c0_26 = arith.constant 0 : index
    %c0_27 = arith.constant 0 : index
    %25 = vector.load %arg5[%c0_25, %c0_26, %c0_27] : memref<7x11x2xf32, #tpu.memory_space<vmem>>, vector<1x11x2xf32>
    %26 = vector.shape_cast %25 : vector<1x11x2xf32> to vector<11x2xf32>
    %cst_28 = arith.constant dense<0.000000e+00> : vector<44x2xf32>
    %27 = tpu.matmul %24, %26, %cst_28 {dimension_numbers = #tpu.dot_dimension_numbers<[1], [0], [0], [1], [0, 0, 1, 1], [], []>} : vector<44x11xf32>, vector<11x2xf32>, vector<44x2xf32> -> vector<44x2xf32>
    %c1_29 = arith.constant 1 : index
    %c0_30 = arith.constant 0 : index
    %c0_31 = arith.constant 0 : index
    %28 = vector.load %arg5[%c1_29, %c0_30, %c0_31] : memref<7x11x2xf32, #tpu.memory_space<vmem>>, vector<1x11x2xf32>
    %29 = vector.shape_cast %28 : vector<1x11x2xf32> to vector<11x2xf32>
    %cst_32 = arith.constant dense<0.000000e+00> : vector<44x2xf32>
    %30 = tpu.matmul %24, %29, %cst_32 {dimension_numbers = #tpu.dot_dimension_numbers<[1], [0], [0], [1], [0, 0, 1, 1], [], []>} : vector<44x11xf32>, vector<11x2xf32>, vector<44x2xf32> -> vector<44x2xf32>
    %31 = arith.maximumf %27, %30 : vector<44x2xf32>
    %c2_33 = arith.constant 2 : index
    %c0_34 = arith.constant 0 : index
    %c0_35 = arith.constant 0 : index
    %32 = vector.load %arg5[%c2_33, %c0_34, %c0_35] : memref<7x11x2xf32, #tpu.memory_space<vmem>>, vector<1x11x2xf32>
    %33 = vector.shape_cast %32 : vector<1x11x2xf32> to vector<11x2xf32>
    %cst_36 = arith.constant dense<0.000000e+00> : vector<44x2xf32>
    %34 = tpu.matmul %24, %33, %cst_36 {dimension_numbers = #tpu.dot_dimension_numbers<[1], [0], [0], [1], [0, 0, 1, 1], [], []>} : vector<44x11xf32>, vector<11x2xf32>, vector<44x2xf32> -> vector<44x2xf32>
    %35 = arith.maximumf %31, %34 : vector<44x2xf32>
    %c3 = arith.constant 3 : index
    %c0_37 = arith.constant 0 : index
    %c0_38 = arith.constant 0 : index
    %36 = vector.load %arg5[%c3, %c0_37, %c0_38] : memref<7x11x2xf32, #tpu.memory_space<vmem>>, vector<1x11x2xf32>
    %37 = vector.shape_cast %36 : vector<1x11x2xf32> to vector<11x2xf32>
    %cst_39 = arith.constant dense<0.000000e+00> : vector<44x2xf32>
    %38 = tpu.matmul %24, %37, %cst_39 {dimension_numbers = #tpu.dot_dimension_numbers<[1], [0], [0], [1], [0, 0, 1, 1], [], []>} : vector<44x11xf32>, vector<11x2xf32>, vector<44x2xf32> -> vector<44x2xf32>
    %39 = arith.maximumf %35, %38 : vector<44x2xf32>
    %c4 = arith.constant 4 : index
    %c0_40 = arith.constant 0 : index
    %c0_41 = arith.constant 0 : index
    %40 = vector.load %arg5[%c4, %c0_40, %c0_41] : memref<7x11x2xf32, #tpu.memory_space<vmem>>, vector<1x11x2xf32>
    %41 = vector.shape_cast %40 : vector<1x11x2xf32> to vector<11x2xf32>
    %cst_42 = arith.constant dense<0.000000e+00> : vector<44x2xf32>
    %42 = tpu.matmul %24, %41, %cst_42 {dimension_numbers = #tpu.dot_dimension_numbers<[1], [0], [0], [1], [0, 0, 1, 1], [], []>} : vector<44x11xf32>, vector<11x2xf32>, vector<44x2xf32> -> vector<44x2xf32>
    %43 = arith.maximumf %39, %42 : vector<44x2xf32>
    %c5 = arith.constant 5 : index
    %c0_43 = arith.constant 0 : index
    %c0_44 = arith.constant 0 : index
    %44 = vector.load %arg5[%c5, %c0_43, %c0_44] : memref<7x11x2xf32, #tpu.memory_space<vmem>>, vector<1x11x2xf32>
    %45 = vector.shape_cast %44 : vector<1x11x2xf32> to vector<11x2xf32>
    %cst_45 = arith.constant dense<0.000000e+00> : vector<44x2xf32>
    %46 = tpu.matmul %24, %45, %cst_45 {dimension_numbers = #tpu.dot_dimension_numbers<[1], [0], [0], [1], [0, 0, 1, 1], [], []>} : vector<44x11xf32>, vector<11x2xf32>, vector<44x2xf32> -> vector<44x2xf32>
    %47 = arith.maximumf %43, %46 : vector<44x2xf32>
    %c6 = arith.constant 6 : index
    %c0_46 = arith.constant 0 : index
    %c0_47 = arith.constant 0 : index
    %48 = vector.load %arg5[%c6, %c0_46, %c0_47] : memref<7x11x2xf32, #tpu.memory_space<vmem>>, vector<1x11x2xf32>
    %49 = vector.shape_cast %48 : vector<1x11x2xf32> to vector<11x2xf32>
    %cst_48 = arith.constant dense<0.000000e+00> : vector<44x2xf32>
    %50 = tpu.matmul %24, %49, %cst_48 {dimension_numbers = #tpu.dot_dimension_numbers<[1], [0], [0], [1], [0, 0, 1, 1], [], []>} : vector<44x11xf32>, vector<11x2xf32>, vector<44x2xf32> -> vector<44x2xf32>
    %51 = arith.maximumf %47, %50 : vector<44x2xf32>
    %c0_49 = arith.constant 0 : index
    %c0_50 = arith.constant 0 : index
    %c0_51 = arith.constant 0 : index
    %52 = vector.load %arg6[%c0_49, %c0_50, %c0_51] : memref<7x8x44xf32, #tpu.memory_space<vmem>>, vector<1x8x44xf32>
    %53 = vector.shape_cast %52 : vector<1x8x44xf32> to vector<8x44xf32>
    %cst_52 = arith.constant dense<0.000000e+00> : vector<8x2xf32>
    %54 = tpu.matmul %53, %51, %cst_52 {dimension_numbers = #tpu.dot_dimension_numbers<[1], [0], [0], [1], [0, 0, 1, 1], [], []>} : vector<8x44xf32>, vector<44x2xf32>, vector<8x2xf32> -> vector<8x2xf32>
    %c1_53 = arith.constant 1 : index
    %c0_54 = arith.constant 0 : index
    %c0_55 = arith.constant 0 : index
    %55 = vector.load %arg6[%c1_53, %c0_54, %c0_55] : memref<7x8x44xf32, #tpu.memory_space<vmem>>, vector<1x8x44xf32>
    %56 = vector.shape_cast %55 : vector<1x8x44xf32> to vector<8x44xf32>
    %cst_56 = arith.constant dense<0.000000e+00> : vector<8x2xf32>
    %57 = tpu.matmul %56, %51, %cst_56 {dimension_numbers = #tpu.dot_dimension_numbers<[1], [0], [0], [1], [0, 0, 1, 1], [], []>} : vector<8x44xf32>, vector<44x2xf32>, vector<8x2xf32> -> vector<8x2xf32>
    %58 = arith.maximumf %54, %57 : vector<8x2xf32>
    %c2_57 = arith.constant 2 : index
    %c0_58 = arith.constant 0 : index
    %c0_59 = arith.constant 0 : index
    %59 = vector.load %arg6[%c2_57, %c0_58, %c0_59] : memref<7x8x44xf32, #tpu.memory_space<vmem>>, vector<1x8x44xf32>
    %60 = vector.shape_cast %59 : vector<1x8x44xf32> to vector<8x44xf32>
    %cst_60 = arith.constant dense<0.000000e+00> : vector<8x2xf32>
    %61 = tpu.matmul %60, %51, %cst_60 {dimension_numbers = #tpu.dot_dimension_numbers<[1], [0], [0], [1], [0, 0, 1, 1], [], []>} : vector<8x44xf32>, vector<44x2xf32>, vector<8x2xf32> -> vector<8x2xf32>
    %62 = arith.maximumf %58, %61 : vector<8x2xf32>
    %c3_61 = arith.constant 3 : index
    %c0_62 = arith.constant 0 : index
    %c0_63 = arith.constant 0 : index
    %63 = vector.load %arg6[%c3_61, %c0_62, %c0_63] : memref<7x8x44xf32, #tpu.memory_space<vmem>>, vector<1x8x44xf32>
    %64 = vector.shape_cast %63 : vector<1x8x44xf32> to vector<8x44xf32>
    %cst_64 = arith.constant dense<0.000000e+00> : vector<8x2xf32>
    %65 = tpu.matmul %64, %51, %cst_64 {dimension_numbers = #tpu.dot_dimension_numbers<[1], [0], [0], [1], [0, 0, 1, 1], [], []>} : vector<8x44xf32>, vector<44x2xf32>, vector<8x2xf32> -> vector<8x2xf32>
    %66 = arith.maximumf %62, %65 : vector<8x2xf32>
    %c4_65 = arith.constant 4 : index
    %c0_66 = arith.constant 0 : index
    %c0_67 = arith.constant 0 : index
    %67 = vector.load %arg6[%c4_65, %c0_66, %c0_67] : memref<7x8x44xf32, #tpu.memory_space<vmem>>, vector<1x8x44xf32>
    %68 = vector.shape_cast %67 : vector<1x8x44xf32> to vector<8x44xf32>
    %cst_68 = arith.constant dense<0.000000e+00> : vector<8x2xf32>
    %69 = tpu.matmul %68, %51, %cst_68 {dimension_numbers = #tpu.dot_dimension_numbers<[1], [0], [0], [1], [0, 0, 1, 1], [], []>} : vector<8x44xf32>, vector<44x2xf32>, vector<8x2xf32> -> vector<8x2xf32>
    %70 = arith.maximumf %66, %69 : vector<8x2xf32>
    %c5_69 = arith.constant 5 : index
    %c0_70 = arith.constant 0 : index
    %c0_71 = arith.constant 0 : index
    %71 = vector.load %arg6[%c5_69, %c0_70, %c0_71] : memref<7x8x44xf32, #tpu.memory_space<vmem>>, vector<1x8x44xf32>
    %72 = vector.shape_cast %71 : vector<1x8x44xf32> to vector<8x44xf32>
    %cst_72 = arith.constant dense<0.000000e+00> : vector<8x2xf32>
    %73 = tpu.matmul %72, %51, %cst_72 {dimension_numbers = #tpu.dot_dimension_numbers<[1], [0], [0], [1], [0, 0, 1, 1], [], []>} : vector<8x44xf32>, vector<44x2xf32>, vector<8x2xf32> -> vector<8x2xf32>
    %74 = arith.maximumf %70, %73 : vector<8x2xf32>
    %c6_73 = arith.constant 6 : index
    %c0_74 = arith.constant 0 : index
    %c0_75 = arith.constant 0 : index
    %75 = vector.load %arg6[%c6_73, %c0_74, %c0_75] : memref<7x8x44xf32, #tpu.memory_space<vmem>>, vector<1x8x44xf32>
    %76 = vector.shape_cast %75 : vector<1x8x44xf32> to vector<8x44xf32>
    %cst_76 = arith.constant dense<0.000000e+00> : vector<8x2xf32>
    %77 = tpu.matmul %76, %51, %cst_76 {dimension_numbers = #tpu.dot_dimension_numbers<[1], [0], [0], [1], [0, 0, 1, 1], [], []>} : vector<8x44xf32>, vector<44x2xf32>, vector<8x2xf32> -> vector<8x2xf32>
    %78 = arith.maximumf %74, %77 : vector<8x2xf32>
    %c0_77 = arith.constant 0 : index
    %c0_78 = arith.constant 0 : index
    %79 = vector.load %arg9[%c0_77, %c0_78] : memref<8x1xf32, #tpu.memory_space<vmem>>, vector<8x1xf32>
    %c0_79 = arith.constant 0 : index
    %c0_80 = arith.constant 0 : index
    %c0_81 = arith.constant 0 : index
    %80 = vector.load %arg7[%c0_79, %c0_80, %c0_81] : memref<3x2x2xf32, #tpu.memory_space<vmem>>, vector<1x2x2xf32>
    %81 = vector.shape_cast %80 : vector<1x2x2xf32> to vector<2x2xf32>
    %cst_82 = arith.constant dense<0.000000e+00> : vector<8x2xf32>
    %82 = tpu.matmul %78, %81, %cst_82 {dimension_numbers = #tpu.dot_dimension_numbers<[1], [0], [0], [1], [0, 0, 1, 1], [], []>} : vector<8x2xf32>, vector<2x2xf32>, vector<8x2xf32> -> vector<8x2xf32>
    %c0_83 = arith.constant 0 : index
    %c0_84 = arith.constant 0 : index
    %c0_85 = arith.constant 0 : index
    %83 = vector.load %arg8[%c0_83, %c0_84, %c0_85] : memref<3x8x8xf32, #tpu.memory_space<vmem>>, vector<1x8x8xf32>
    %84 = vector.shape_cast %83 : vector<1x8x8xf32> to vector<8x8xf32>
    %cst_86 = arith.constant dense<0.000000e+00> : vector<8x2xf32>
    %85 = tpu.matmul %84, %82, %cst_86 {dimension_numbers = #tpu.dot_dimension_numbers<[1], [0], [0], [1], [0, 0, 1, 1], [], []>} : vector<8x8xf32>, vector<8x2xf32>, vector<8x2xf32> -> vector<8x2xf32>
    %86 = vector.broadcast %79 : vector<8x1xf32> to vector<8x2xf32>
    %87 = arith.addf %86, %85 : vector<8x2xf32>
    %c1_87 = arith.constant 1 : index
    %c0_88 = arith.constant 0 : index
    %c0_89 = arith.constant 0 : index
    %88 = vector.load %arg7[%c1_87, %c0_88, %c0_89] : memref<3x2x2xf32, #tpu.memory_space<vmem>>, vector<1x2x2xf32>
    %89 = vector.shape_cast %88 : vector<1x2x2xf32> to vector<2x2xf32>
    %cst_90 = arith.constant dense<0.000000e+00> : vector<8x2xf32>
    %90 = tpu.matmul %78, %89, %cst_90 {dimension_numbers = #tpu.dot_dimension_numbers<[1], [0], [0], [1], [0, 0, 1, 1], [], []>} : vector<8x2xf32>, vector<2x2xf32>, vector<8x2xf32> -> vector<8x2xf32>
    %c1_91 = arith.constant 1 : index
    %c0_92 = arith.constant 0 : index
    %c0_93 = arith.constant 0 : index
    %91 = vector.load %arg8[%c1_91, %c0_92, %c0_93] : memref<3x8x8xf32, #tpu.memory_space<vmem>>, vector<1x8x8xf32>
    %92 = vector.shape_cast %91 : vector<1x8x8xf32> to vector<8x8xf32>
    %cst_94 = arith.constant dense<0.000000e+00> : vector<8x2xf32>
    %93 = tpu.matmul %92, %90, %cst_94 {dimension_numbers = #tpu.dot_dimension_numbers<[1], [0], [0], [1], [0, 0, 1, 1], [], []>} : vector<8x8xf32>, vector<8x2xf32>, vector<8x2xf32> -> vector<8x2xf32>
    %94 = arith.addf %87, %93 : vector<8x2xf32>
    %c2_95 = arith.constant 2 : index
    %c0_96 = arith.constant 0 : index
    %c0_97 = arith.constant 0 : index
    %95 = vector.load %arg7[%c2_95, %c0_96, %c0_97] : memref<3x2x2xf32, #tpu.memory_space<vmem>>, vector<1x2x2xf32>
    %96 = vector.shape_cast %95 : vector<1x2x2xf32> to vector<2x2xf32>
    %cst_98 = arith.constant dense<0.000000e+00> : vector<8x2xf32>
    %97 = tpu.matmul %78, %96, %cst_98 {dimension_numbers = #tpu.dot_dimension_numbers<[1], [0], [0], [1], [0, 0, 1, 1], [], []>} : vector<8x2xf32>, vector<2x2xf32>, vector<8x2xf32> -> vector<8x2xf32>
    %c2_99 = arith.constant 2 : index
    %c0_100 = arith.constant 0 : index
    %c0_101 = arith.constant 0 : index
    %98 = vector.load %arg8[%c2_99, %c0_100, %c0_101] : memref<3x8x8xf32, #tpu.memory_space<vmem>>, vector<1x8x8xf32>
    %99 = vector.shape_cast %98 : vector<1x8x8xf32> to vector<8x8xf32>
    %cst_102 = arith.constant dense<0.000000e+00> : vector<8x2xf32>
    %100 = tpu.matmul %99, %97, %cst_102 {dimension_numbers = #tpu.dot_dimension_numbers<[1], [0], [0], [1], [0, 0, 1, 1], [], []>} : vector<8x8xf32>, vector<8x2xf32>, vector<8x2xf32> -> vector<8x2xf32>
    %101 = arith.addf %94, %100 : vector<8x2xf32>
    %c0_103 = arith.constant 0 : index
    %c0_104 = arith.constant 0 : index
    %102 = vector.load %arg10[%c0_103, %c0_104] : memref<2x24xf32, #tpu.memory_space<vmem>>, vector<2x24xf32>
    %cst_105 = arith.constant dense<0.000000e+00> : vector<8x24xf32>
    %103 = tpu.matmul %101, %102, %cst_105 {dimension_numbers = #tpu.dot_dimension_numbers<[1], [0], [0], [1], [0, 0, 1, 1], [], []>} : vector<8x2xf32>, vector<2x24xf32>, vector<8x24xf32> -> vector<8x24xf32>
    %c0_106 = arith.constant 0 : index
    %c0_107 = arith.constant 0 : index
    %104 = vector.load %arg11[%c0_106, %c0_107] : memref<96x8xf32, #tpu.memory_space<vmem>>, vector<96x8xf32>
    %cst_108 = arith.constant dense<0.000000e+00> : vector<96x24xf32>
    %105 = tpu.matmul %104, %103, %cst_108 {dimension_numbers = #tpu.dot_dimension_numbers<[1], [0], [0], [1], [0, 0, 1, 1], [], []>} : vector<96x8xf32>, vector<8x24xf32>, vector<96x24xf32> -> vector<96x24xf32>
    %c0_109 = arith.constant 0 : index
    %c0_110 = arith.constant 0 : index
    %c0_111 = arith.constant 0 : index
    %106 = vector.load %arg12[%c0_109, %c0_110, %c0_111] : memref<1x96x24xf32, #tpu.memory_space<vmem>>, vector<1x96x24xf32>
    %107 = vector.shape_cast %106 : vector<1x96x24xf32> to vector<96x24xf32>
    %108 = vector.shape_cast %105 : vector<96x24xf32> to vector<1x96x24xf32>
    tpu.vector_store %arg12[%c0_109, %c0_110, %c0_111], %108 {strides = array<i32>} : memref<1x96x24xf32, #tpu.memory_space<vmem>>, vector<1x96x24xf32>,
    return
  }
  func.func @transform_0(%arg0: i32) -> (i32, i32, i32) {
    %c0_i32 = arith.constant 0 : i32
    %c0_i32_0 = arith.constant 0 : i32
    %c0_i32_1 = arith.constant 0 : i32
    return %arg0, %c0_i32, %c0_i32_0 : i32, i32, i32
  }
  func.func @transform_1(%arg0: i32) -> (i32, i32, i32) {
    %c0_i32 = arith.constant 0 : i32
    %c0_i32_0 = arith.constant 0 : i32
    %c0_i32_1 = arith.constant 0 : i32
    %c0_i32_2 = arith.constant 0 : i32
    return %c0_i32, %c0_i32_0, %c0_i32_1 : i32, i32, i32
  }
  func.func @transform_2(%arg0: i32) -> (i32, i32, i32) {
    %c0_i32 = arith.constant 0 : i32
    %c0_i32_0 = arith.constant 0 : i32
    %c0_i32_1 = arith.constant 0 : i32
    %c0_i32_2 = arith.constant 0 : i32
    return %c0_i32, %c0_i32_0, %c0_i32_1 : i32, i32, i32
  }
  func.func @transform_3(%arg0: i32) -> (i32, i32) {
    %c0_i32 = arith.constant 0 : i32
    %c0_i32_0 = arith.constant 0 : i32
    %c0_i32_1 = arith.constant 0 : i32
    return %c0_i32, %c0_i32_0 : i32, i32
  }
  func.func @transform_4(%arg0: i32) -> (i32, i32, i32) {
    %c0_i32 = arith.constant 0 : i32
    %c0_i32_0 = arith.constant 0 : i32
    %c0_i32_1 = arith.constant 0 : i32
    %c0_i32_2 = arith.constant 0 : i32
    return %c0_i32, %c0_i32_0, %c0_i32_1 : i32, i32, i32
  }
  func.func @transform_5(%arg0: i32) -> (i32, i32, i32) {
    %c0_i32 = arith.constant 0 : i32
    %c0_i32_0 = arith.constant 0 : i32
    %c0_i32_1 = arith.constant 0 : i32
    %c0_i32_2 = arith.constant 0 : i32
    return %c0_i32, %c0_i32_0, %c0_i32_1 : i32, i32, i32
  }
  func.func @transform_6(%arg0: i32) -> (i32, i32, i32) {
    %c0_i32 = arith.constant 0 : i32
    %c0_i32_0 = arith.constant 0 : i32
    %c0_i32_1 = arith.constant 0 : i32
    %c0_i32_2 = arith.constant 0 : i32
    return %c0_i32, %c0_i32_0, %c0_i32_1 : i32, i32, i32
  }
  func.func @transform_7(%arg0: i32) -> (i32, i32, i32) {
    %c0_i32 = arith.constant 0 : i32
    %c0_i32_0 = arith.constant 0 : i32
    %c0_i32_1 = arith.constant 0 : i32
    %c0_i32_2 = arith.constant 0 : i32
    return %c0_i32, %c0_i32_0, %c0_i32_1 : i32, i32, i32
  }
  func.func @transform_8(%arg0: i32) -> (i32, i32) {
    %c0_i32 = arith.constant 0 : i32
    %c0_i32_0 = arith.constant 0 : i32
    %c0_i32_1 = arith.constant 0 : i32
    return %c0_i32, %c0_i32_0 : i32, i32
  }
  func.func @transform_9(%arg0: i32) -> (i32, i32) {
    %c0_i32 = arith.constant 0 : i32
    %c0_i32_0 = arith.constant 0 : i32
    %c0_i32_1 = arith.constant 0 : i32
    return %c0_i32, %c0_i32_0 : i32, i32
  }
  func.func @transform_10(%arg0: i32) -> (i32, i32) {
    %c0_i32 = arith.constant 0 : i32
    %c0_i32_0 = arith.constant 0 : i32
    %c0_i32_1 = arith.constant 0 : i32
    return %c0_i32, %c0_i32_0 : i32, i32
  }
  func.func @transform_11(%arg0: i32) -> (i32, i32, i32) {
    %c0_i32 = arith.constant 0 : i32
    %c0_i32_0 = arith.constant 0 : i32
    %c0_i32_1 = arith.constant 0 : i32
    return %arg0, %c0_i32, %c0_i32_0 : i32, i32, i32
  }
}

module attributes {stable_mosaic.version = 11 : i64} {
  func.func @tail_kernel(%arg0: i32, %arg1: i32, %arg2: memref<1x8x576xf32, #tpu.memory_space<vmem>>, %arg3: memref<1x4x576xf32, #tpu.memory_space<vmem>>, %arg4: memref<1x4x576xf32, #tpu.memory_space<vmem>>, %arg5: memref<8x4xf32, #tpu.memory_space<vmem>>, %arg6: memref<8x1xf32, #tpu.memory_space<vmem>>, %arg7: memref<1x8x576xf32, #tpu.memory_space<vmem>>) attributes {dimension_semantics = [#tpu.dimension_semantics<parallel>, #tpu.dimension_semantics<parallel>], iteration_bounds = array<i64: 2, 1>, scalar_prefetch = 0 : i64, scratch_operands = 0 : i64, tpu.core_type = #tpu.core_type<tc>, window_params = [{transform_indices = @transform_0, window_bounds = array<i64: 1, 8, 576>}, {transform_indices = @transform_1, window_bounds = array<i64: 1, 4, 576>}, {transform_indices = @transform_2, window_bounds = array<i64: 1, 4, 576>}, {pipeline_mode = #tpu.pipeline_mode<synchronous>, transform_indices = @transform_3, window_bounds = array<i64: 8, 4>}, {pipeline_mode = #tpu.pipeline_mode<synchronous>, transform_indices = @transform_4, window_bounds = array<i64: 8, 1>}, {transform_indices = @transform_5, window_bounds = array<i64: 1, 8, 576>}]} {
    %c0 = arith.constant 0 : index
    %c0_0 = arith.constant 0 : index
    %c0_1 = arith.constant 0 : index
    %0 = vector.load %arg4[%c0, %c0_0, %c0_1] : memref<1x4x576xf32, #tpu.memory_space<vmem>>, vector<1x4x576xf32>
    %1 = vector.shape_cast %0 : vector<1x4x576xf32> to vector<4x576xf32>
    %c0_2 = arith.constant 0 : index
    %c0_3 = arith.constant 0 : index
    %c0_4 = arith.constant 0 : index
    %2 = vector.load %arg3[%c0_2, %c0_3, %c0_4] : memref<1x4x576xf32, #tpu.memory_space<vmem>>, vector<1x4x576xf32>
    %3 = vector.shape_cast %2 : vector<1x4x576xf32> to vector<4x576xf32>
    %4 = arith.addf %1, %3 : vector<4x576xf32>
    %c0_5 = arith.constant 0 : index
    %c0_6 = arith.constant 0 : index
    %5 = vector.load %arg5[%c0_5, %c0_6] : memref<8x4xf32, #tpu.memory_space<vmem>>, vector<8x4xf32>
    %cst = arith.constant dense<0.000000e+00> : vector<8x576xf32>
    %6 = tpu.matmul %5, %4, %cst {dimension_numbers = #tpu.dot_dimension_numbers<[1], [0], [0], [1], [0, 0, 1, 1], [], []>} : vector<8x4xf32>, vector<4x576xf32>, vector<8x576xf32> -> vector<8x576xf32>
    %c0_7 = arith.constant 0 : index
    %c0_8 = arith.constant 0 : index
    %7 = vector.load %arg6[%c0_7, %c0_8] : memref<8x1xf32, #tpu.memory_space<vmem>>, vector<8x1xf32>
    %8 = vector.broadcast %7 : vector<8x1xf32> to vector<8x576xf32>
    %9 = arith.addf %6, %8 : vector<8x576xf32>
    %cst_9 = arith.constant 0.000000e+00 : f32
    %10 = vector.broadcast %cst_9 : f32 to vector<8x576xf32>
    %11 = arith.subf %10, %9 : vector<8x576xf32>
    %12 = math.exp %11 : vector<8x576xf32>
    %cst_10 = arith.constant 1.000000e+00 : f32
    %13 = vector.broadcast %cst_10 : f32 to vector<8x576xf32>
    %14 = arith.addf %13, %12 : vector<8x576xf32>
    %15 = tpu.reciprocal %14 : vector<8x576xf32> -> vector<8x576xf32>
    %c0_11 = arith.constant 0 : index
    %c0_12 = arith.constant 0 : index
    %c0_13 = arith.constant 0 : index
    %16 = vector.load %arg2[%c0_11, %c0_12, %c0_13] : memref<1x8x576xf32, #tpu.memory_space<vmem>>, vector<1x8x576xf32>
    %17 = vector.shape_cast %16 : vector<1x8x576xf32> to vector<8x576xf32>
    %18 = arith.mulf %17, %15 : vector<8x576xf32>
    %c0_14 = arith.constant 0 : index
    %c0_15 = arith.constant 0 : index
    %c0_16 = arith.constant 0 : index
    %19 = vector.load %arg7[%c0_14, %c0_15, %c0_16] : memref<1x8x576xf32, #tpu.memory_space<vmem>>, vector<1x8x576xf32>
    %20 = vector.shape_cast %19 : vector<1x8x576xf32> to vector<8x576xf32>
    %21 = vector.shape_cast %18 : vector<8x576xf32> to vector<1x8x576xf32>
    tpu.vector_store %arg7[%c0_14, %c0_15, %c0_16], %21 {strides = array<i32>} : memref<1x8x576xf32, #tpu.memory_space<vmem>>, vector<1x8x576xf32>,
    return
  }
  func.func @transform_0(%arg0: i32, %arg1: i32) -> (i32, i32, i32) {
    %c0_i32 = arith.constant 0 : i32
    %c0_i32_0 = arith.constant 0 : i32
    return %arg0, %c0_i32, %arg1 : i32, i32, i32
  }
  func.func @transform_1(%arg0: i32, %arg1: i32) -> (i32, i32, i32) {
    %c0_i32 = arith.constant 0 : i32
    %c0_i32_0 = arith.constant 0 : i32
    return %arg0, %c0_i32, %arg1 : i32, i32, i32
  }
  func.func @transform_2(%arg0: i32, %arg1: i32) -> (i32, i32, i32) {
    %c0_i32 = arith.constant 0 : i32
    %c0_i32_0 = arith.constant 0 : i32
    return %arg0, %c0_i32, %arg1 : i32, i32, i32
  }
  func.func @transform_3(%arg0: i32, %arg1: i32) -> (i32, i32) {
    %c0_i32 = arith.constant 0 : i32
    %c0_i32_0 = arith.constant 0 : i32
    %c0_i32_1 = arith.constant 0 : i32
    return %c0_i32, %c0_i32_0 : i32, i32
  }
  func.func @transform_4(%arg0: i32, %arg1: i32) -> (i32, i32) {
    %c0_i32 = arith.constant 0 : i32
    %c0_i32_0 = arith.constant 0 : i32
    %c0_i32_1 = arith.constant 0 : i32
    return %c0_i32, %c0_i32_0 : i32, i32
  }
  func.func @transform_5(%arg0: i32, %arg1: i32) -> (i32, i32, i32) {
    %c0_i32 = arith.constant 0 : i32
    %c0_i32_0 = arith.constant 0 : i32
    return %arg0, %c0_i32, %arg1 : i32, i32, i32
  }
}

</mosaic_0001>

<bundles_post_ra>
// kernel: esa_forward_pallas.3
= control target key start
LH: loop header
LB: loop body
LE: loop exit
PB: predicated region body
PF: predicated region fallthrough
CT: control target
= control target key end

     0   :  { %s626_s12 = smov 0   ;;  %s628_s13 = smov 0   ;;  %s665_s0 = inlined_call_operand.vmem [shape: f32[2,8,576], index: 0, kind: input, shape index: {}]   ;;  %s666_s1 = inlined_call_operand.vmem [shape: f32[8,8], index: 1, kind: input, shape index: {}]   ;;  %s667_s2 = inlined_call_operand.vmem [shape: f32[8,1], index: 2, kind: input, shape index: {}]   ;;  %s668_s3 = inlined_call_operand.vmem [shape: f32[2,8,576], index: 3, kind: output, shape index: {}]  }
   0x1   :  { %s630_s14 = smov 0  }
   0x2 LB: > { %s25_s15 = sadd.s32 1, %s597_s13  ;;  %p535_p0 = scmp.ge.s32.totalorder %s601_s14, 1  ;;  %s601_s14 = sphi %s630_s14, %s13_s14   ;;  %s597_s13 = sphi %s628_s13, %s670_s13   ;;  %s593_s12 = sphi %s626_s12, %s669_s12  }
   0x3   : > { %p27_p1 = scmp.ge.s32.totalorder %s25_s15, 2  ;;  %p158_p2 = scmp.lt.s32.totalorder %s601_s14, 3 }
   0x5   : > { %s672_s15 = smov (%p27_p1, %s25_s15), 0  ;;  %p159_p3 = pnand %p535_p0, %p158_p2 }
   0x6   : > { %p191_p4 = scmp.lt.s32.totalorder (!%p159_p3), %s593_s12, 1  ;;  %v603_v0 = vmov (!%p159_p3), 0.0   ;;  %v216_v1 = vld [vmem:[%s667_s2] sm:$0xff] (!%p159_p3)  ;;  %v604_v2 = vmov (!%p159_p3), 0   ;;  %vm222_vm0 = vcmask (!%p159_p3), 64512   ;;  %vm605_vm1 = vmmov (!%p159_p3), 0  }
   0x7   : > { %162 = sbr.rel (%p159_p3) target bundleno = 240 (0xf0), region = 32  ;;  %290 = vmatprep.mubr.f32.mxu0 (!%p159_p3), %v603_v0  ;;  %361 = vmatprep.mubr.f32.mxu1 (!%p159_p3), %v603_v0  ;;  %v210_v3 = vld [vmem:[%s666_s1] sm:$0xff] (!%p159_p3)  ;;  %vm442_vm2 = vcmask (!%p159_p3), 523264  }
   0x8   : > { %578 = vset.pattern.permute.xlu0 (!%p159_p3), %v604_v2 }
   0x9   : > { %219 = vperm.xlu0 (!%p159_p3), %578, %v216_v1  }
   0xe   : > { %s674_s12 = smov (!%p191_p4, %s593_s12), 1 }
   0xf   : > { %s550_s18 = smul.u32 40, %s674_s12 }
  0x11   : > { %s198_s21 = scalar_lea.vmem %s665_s0, %s550_s18  ;;  %s208_s26 = scalar_lea.vmem %s668_s3, %s550_s18 }
  0x12   : > { %v212_v4 = vld [vmem:[%s198_s21 + $0x8] sm:$0xff]  ;;  %v211_v5 = vld [vmem:[%s198_s21] sm:$0xff]  ;;  %v214_v6 = vld [vmem:[%s198_s21 + $0x18] sm:$0xff] }
  0x13   : > { %226 = vmatprep.subr.mxu0 %v212_v4  ;;  %297 = vmatprep.subr.mxu1 %v214_v6  ;;  %v215_v7 = vld [vmem:[%s198_s21 + $0x20] sm:$0xff]  ;;  %v213_v8 = vld [vmem:[%s198_s21 + $0x10] sm:$0xff] }
  0x14   : > { %227 = vmatpush1.msra.mxu0 %v211_v5  ;;  %298 = vmatpush1.msra.mxu1 %v213_v8 }
  0x15   : > { %538 = vmatmul.mubr.msk.f32.vlgmr.msra.gmra.mrb[0].mxu0 %vm222_vm0, %v210_v3  ;;  %545 = vmatprep.subr.mxu0 %v603_v0 }
  0x16   : > { %546 = vmatpush3.msra.mxu0 %v215_v7  ;;  %539 = vmatmul.mubr.msk.f32.vlgmr.msra.gmra.mrb[0].mxu1 %vm222_vm0, %v210_v3 }
  0x17   : > { %547 = vmatprep.mubr.msk.f32.mxu0 %vm605_vm1, %v603_v0 }
  0x19   : > { %548 = vmatmul.mubr.msk.f32.vlgmr.msra.gmra.mrb[2].mxu0 %vm222_vm0, %v210_v3 }
  0x88   : > { %v220_v9 = vpop.permute.xlu0 %219 }
  0xe8   : > { %v292_v10 = vpop.f32.mrb[0].mxu0 }
  0xe9   : > { %v293_v11 = vadd.f32 %v292_v10, %v220_v9  ;;  %v294_v12 = vpop.f32.mrb[1].mxu0  ;;  %v363_v13 = vpop.f32.mrb[0].mxu1 }
  0xea   : > { %v295_v14 = vadd.f32 %v294_v12, %v220_v9  ;;  %v364_v15 = vadd.f32 %v363_v13, %v220_v9  ;;  %v365_v16 = vpop.f32.mrb[1].mxu1 }
  0xeb   : > { %438 = vst [vmem:[%s208_s26] sm:$0xff] %v293_v11  ;;  %v366_v17 = vadd.f32 %v365_v16, %v220_v9 }
  0xec   : > { %439 = vst [vmem:[%s208_s26 + $0x8] sm:$0xff] %v295_v14  ;;  %440 = vst [vmem:[%s208_s26 + $0x10] sm:$0xff] %v364_v15  ;;  %v434_v18 = vpop.f32.mrb[2].mxu0 }
  0xed   : > { %441 = vst [vmem:[%s208_s26 + $0x18] sm:$0xff] %v366_v17  ;;  %v435_v19 = vadd.f32 %v434_v18, %v220_v9  ;;  %v549_v20 = vpop.f32.mrb[3].mxu0 }
  0xef   : > { %443 = vst.msk [vmem:[%s208_s26 + $0x20] sm:$0xff] %vm442_vm2, %v435_v19 }
  0xf0 PF: > { %s13_s14 = sadd.s32 1, %s601_s14   ;;  %s669_s12 = smov %s597_s13 }
  0xf1   : > { %p10_p5 = scmp.ge.s32.totalorder %s13_s14, 4   ;;  %s670_s13 = smov %s672_s15 }
  0xf3   :  { %12 = sbr.rel (!%p10_p5) target bundleno = 2 (0x2), region = 62 }

// kernel: esa_forward_pallas.5
= control target key start
LH: loop header
LB: loop body
LE: loop exit
PB: predicated region body
PF: predicated region fallthrough
CT: control target
= control target key end

     0   :  { %s881_s18 = smov 0   ;;  %s883_s19 = smov 0   ;;  %s930_s0 = inlined_call_operand.vmem [shape: f32[2,8,576], index: 0, kind: input, shape index: {}]   ;;  %s931_s1 = inlined_call_operand.vmem [shape: f32[2,4,576], index: 1, kind: input, shape index: {}]   ;;  %s932_s2 = inlined_call_operand.vmem [shape: f32[2,4,576], index: 2, kind: input, shape index: {}]   ;;  %s933_s3 = inlined_call_operand.vmem [shape: f32[8,4], index: 3, kind: input, shape index: {}]   ;;  %s934_s4 = inlined_call_operand.vmem [shape: f32[8,1], index: 4, kind: input, shape index: {}]   ;;  %s935_s5 = inlined_call_operand.vmem [shape: f32[2,8,576], index: 5, kind: output, shape index: {}]  }
   0x1   :  { %s885_s20 = smov 0  }
   0x2 LB: > { %s27_s21 = sadd.s32 1, %s842_s19  ;;  %p752_p0 = scmp.ge.s32.totalorder %s846_s20, 1  ;;  %s846_s20 = sphi %s885_s20, %s15_s20   ;;  %s842_s19 = sphi %s883_s19, %s937_s19   ;;  %s838_s18 = sphi %s881_s18, %s936_s18  }
   0x3   : > { %p29_p1 = scmp.ge.s32.totalorder %s27_s21, 2  ;;  %p242_p2 = scmp.lt.s32.totalorder %s846_s20, 3 }
   0x5   : > { %s939_s21 = smov (%p29_p1, %s27_s21), 0  ;;  %p243_p3 = pnand %p752_p0, %p242_p2 }
   0x6   : > { %p297_p4 = scmp.lt.s32.totalorder (!%p243_p3), %s838_s18, 1  ;;  %v848_v0 = vmov (!%p243_p3), 0.0   ;;  %v346_v1 = vld [vmem:[%s934_s4] sm:$0xff] (!%p243_p3)  ;;  %v849_v2 = vmov (!%p243_p3), 0   ;;  %vm361_vm0 = vcmask (!%p243_p3), 1043456   ;;  %vm357_vm1 = vcmask (!%p243_p3), 31744  }
   0x7   : > { %246 = sbr.rel (%p243_p3) target bundleno = 275 (0x113), region = 40  ;;  %436 = vmatprep.mubr.f32.mxu0 (!%p243_p3), %v848_v0  ;;  %507 = vmatprep.mubr.f32.mxu1 (!%p243_p3), %v848_v0  ;;  %v345_v13 = vld [vmem:[%s933_s3] sm:$0xff] (!%p243_p3)  ;;  %vm850_vm2 = vmmov (!%p243_p3), 0   ;;  %vm623_vm3 = vcmask (!%p243_p3), 523264  }
   0x8   : > { %803 = vset.pattern.permute.xlu0 (!%p243_p3), %v849_v2 }
   0x9   : > { %349 = vperm.xlu0 (!%p243_p3), %803, %v346_v1  }
   0xe   : > { %s941_s18 = smov (!%p297_p4, %s838_s18), 1 }
   0xf   : > { %s775_s24 = smul.u32 20, %s941_s18 }
  0x10   : > { %s774_s8 = smul.u32 40, %s941_s18 }
  0x11   : > { %s314_s27 = scalar_lea.vmem %s931_s1, %s775_s24  ;;  %s324_s30 = scalar_lea.vmem %s932_s2, %s775_s24 }
  0x12   : > { %v336_v3 = vld [vmem:[%s324_s30] sm:$0xff]  ;;  %v338_v4 = vld [vmem:[%s324_s30 + $0x10] sm:$0xf]  ;;  %v337_v8 = vld [vmem:[%s324_s30 + $0x8] sm:$0xff]  ;;  %s304_s11 = scalar_lea.vmem %s930_s0, %s774_s8  ;;  %s334_s14 = scalar_lea.vmem %s935_s5, %s774_s8 }
  0x13   : > { %v339_v5 = vld [vmem:[%s314_s27] sm:$0xff]  ;;  %v341_v6 = vld [vmem:[%s314_s27 + $0x10] sm:$0xf]  ;;  %v340_v9 = vld [vmem:[%s314_s27 + $0x8] sm:$0xff] }
  0x14   : > { %v342_v7 = vadd.f32 %v339_v5, %v336_v3  ;;  %v343_v10 = vadd.f32 %v340_v9, %v337_v8  ;;  %v344_v12 = vadd.f32 %v341_v6, %v338_v4  ;;  %v609_v47 = vld [vmem:[%s304_s11] sm:$0xff]  ;;  %v610_v48 = vld [vmem:[%s304_s11 + $0x8] sm:$0xff]  ;;  %v611_v50 = vld [vmem:[%s304_s11 + $0x10] sm:$0xff] }
  0x15   : > { %v612_v53 = vld [vmem:[%s304_s11 + $0x18] sm:$0xff]  ;;  %v613_v56 = vld [vmem:[%s304_s11 + $0x20] sm:$0xff] }
  0x16   : > { %v355_v11 = vcombine.high %v342_v7, %v342_v7  ;;  %v356_v14 = vcombine.high %v343_v10, %v343_v10 }
  0x18   : > { %757 = vmatprep.subr.msk.mxu0 %vm361_vm0, %v355_v11  ;;  %760 = vmatprep.subr.msk.mxu1 %vm361_vm0, %v356_v14 }
  0x19   : > { %758 = vmatpush1.msk.msra.mxu0 %vm361_vm0, %v342_v7  ;;  %761 = vmatpush1.msk.msra.mxu1 %vm361_vm0, %v343_v10 }
  0x1a   : > { %759 = vmatmul.mubr.msk.f32.vlgmr.msra.gmra.mrb[0].mxu0 %vm357_vm1, %v345_v13  ;;  %769 = vmatprep.subr.mxu0 %v848_v0 }
  0x1b   : > { %770 = vmatpush3.msk.msra.mxu0 %vm361_vm0, %v344_v12  ;;  %762 = vmatmul.mubr.msk.f32.vlgmr.msra.gmra.mrb[0].mxu1 %vm357_vm1, %v345_v13 }
  0x1c   : > { %771 = vmatprep.mubr.msk.f32.mxu0 %vm850_vm2, %v848_v0 }
  0x1e   : > { %772 = vmatmul.mubr.msk.f32.vlgmr.msra.gmra.mrb[2].mxu0 %vm357_vm1, %v345_v13 }
  0x88   : > { %v350_v15 = vpop.permute.xlu0 %349 }
  0xed   : > { %v438_v16 = vpop.f32.mrb[0].mxu0 }
  0xee   : > { %v439_v17 = vadd.f32 %v438_v16, %v350_v15  ;;  %v440_v18 = vpop.f32.mrb[1].mxu0  ;;  %v509_v20 = vpop.f32.mrb[0].mxu1 }
  0xef   : > { %v441_v19 = vadd.f32 %v440_v18, %v350_v15  ;;  %v510_v22 = vadd.f32 %v509_v20, %v350_v15  ;;  %v511_v23 = vpop.f32.mrb[1].mxu1 }
  0xf0   : > { %v584_v21 = vsub.f32 0.0, %v439_v17  ;;  %v512_v25 = vadd.f32 %v511_v23, %v350_v15 }
  0xf1   : > { %v585_v24 = vsub.f32 0.0, %v441_v19  ;;  %v580_v26 = vpop.f32.mrb[2].mxu0  ;;  %v586_v28 = vsub.f32 0.0, %v510_v22 }
  0xf2   : > { %v589_v27 = vmul.f32 1.442695, %v584_v21  ;;  %v581_v29 = vadd.f32 %v580_v26, %v350_v15  ;;  %v773_v30 = vpop.f32.mrb[3].mxu0  ;;  %v587_v32 = vsub.f32 0.0, %v512_v25 }
  0xf3   : > { %v591_v31 = vmul.f32 1.442695, %v585_v24  ;;  %v593_v33 = vmul.f32 1.442695, %v586_v28 }
  0xf4   : > { %804 = vpow2.f32 %v589_v27  ;;  %v588_v34 = vsub.f32 0.0, %v581_v29  ;;  %v595_v35 = vmul.f32 1.442695, %v587_v32 }
  0xf5   : > { %806 = vpow2.f32 %v591_v31 }
  0xf6   : > { %808 = vpow2.f32 %v593_v33  ;;  %v597_v36 = vmul.f32 1.442695, %v588_v34 }
  0xf7   : > { %810 = vpow2.f32 %v595_v35 }
  0xf8   : > { %812 = vpow2.f32 %v597_v36 }
  0xfe   : > { %v805_v37 = vpop.eup %804 }
  0xff   : > { %v807_v38 = vpop.eup %806  ;;  %v599_v39 = vadd.f32 1.0, %v805_v37 }
 0x100   : > { %v809_v40 = vpop.eup %808  ;;  %v600_v41 = vadd.f32 1.0, %v807_v38 }
 0x101   : > { %v811_v42 = vpop.eup %810  ;;  %814 = vrcp.f32 %v599_v39  ;;  %v601_v43 = vadd.f32 1.0, %v809_v40 }
 0x102   : > { %v813_v44 = vpop.eup %812  ;;  %816 = vrcp.f32 %v600_v41  ;;  %v602_v45 = vadd.f32 1.0, %v811_v42 }
 0x103   : > { %818 = vrcp.f32 %v601_v43  ;;  %v603_v46 = vadd.f32 1.0, %v813_v44 }
 0x104   : > { %820 = vrcp.f32 %v602_v45 }
 0x105   : > { %822 = vrcp.f32 %v603_v46 }
 0x10b   : > { %v815_v49 = vpop.eup %814 }
 0x10c   : > { %v817_v51 = vpop.eup %816  ;;  %v614_v52 = vmul.f32 %v815_v49, %v609_v47 }
 0x10d   : > { %v819_v54 = vpop.eup %818  ;;  %v615_v55 = vmul.f32 %v817_v51, %v610_v48 }
 0x10e   : > { %v821_v57 = vpop.eup %820  ;;  %619 = vst [vmem:[%s334_s14] sm:$0xff] %v614_v52  ;;  %v616_v58 = vmul.f32 %v819_v54, %v611_v50 }
 0x10f   : > { %v823_v59 = vpop.eup %822  ;;  %620 = vst [vmem:[%s334_s14 + $0x8] sm:$0xff] %v615_v55  ;;  %v617_v60 = vmul.f32 %v821_v57, %v612_v53 }
 0x110   : > { %621 = vst [vmem:[%s334_s14 + $0x10] sm:$0xff] %v616_v58  ;;  %v618_v61 = vmul.f32 %v823_v59, %v613_v56 }
 0x111   : > { %622 = vst [vmem:[%s334_s14 + $0x18] sm:$0xff] %v617_v60 }
 0x112   : > { %624 = vst.msk [vmem:[%s334_s14 + $0x20] sm:$0xff] %vm623_vm3, %v618_v61 }
 0x113 PF: > { %s15_s20 = sadd.s32 1, %s846_s20   ;;  %s936_s18 = smov %s842_s19 }
 0x114   : > { %p12_p5 = scmp.ge.s32.totalorder %s15_s20, 4   ;;  %s937_s19 = smov %s939_s21 }
 0x116   :  { %14 = sbr.rel (!%p12_p5) target bundleno = 2 (0x2), region = 76 }

// kernel: esa_forward_pallas.4
= control target key start
LH: loop header
LB: loop body
LE: loop exit
PB: predicated region body
PF: predicated region fallthrough
CT: control target
= control target key end

     0   :  { %s4475_s17 = smov 0   ;;  %s4999_s0 = inlined_call_operand.vmem [shape: f32[2,96,24], index: 0, kind: input, shape index: {}]   ;;  %s5000_s1 = inlined_call_operand.vmem [shape: f32[3,24,11], index: 1, kind: input, shape index: {}]   ;;  %s5001_s2 = inlined_call_operand.vmem [shape: f32[3,44,96], index: 2, kind: input, shape index: {}]   ;;  %s5002_s3 = inlined_call_operand.vmem [shape: f32[44,1], index: 3, kind: input, shape index: {}]   ;;  %s5003_s4 = inlined_call_operand.vmem [shape: f32[7,11,2], index: 4, kind: input, shape index: {}]   ;;  %s5004_s5 = inlined_call_operand.vmem [shape: f32[7,8,44], index: 5, kind: input, shape index: {}]   ;;  %s5005_s6 = inlined_call_operand.vmem [shape: f32[3,2,2], index: 6, kind: input, shape index: {}]   ;;  %s5006_s7 = inlined_call_operand.vmem [shape: f32[3,8,8], index: 7, kind: input, shape index: {}]   ;;  %s5007_s8 = inlined_call_operand.vmem [shape: f32[8,1], index: 8, kind: input, shape index: {}]   ;;  %s5008_s9 = inlined_call_operand.vmem [shape: f32[2,24], index: 9, kind: input, shape index: {}]   ;;  %s5009_s10 = inlined_call_operand.vmem [shape: f32[96,8], index: 10, kind: input, shape index: {}]   ;;  %s5010_s11 = inlined_call_operand.vmem [shape: f32[2,96,24], index: 11, kind: output, shape index: {}]  }
   0x1 LB: > { %s3313_s18 = sadd.s32 4294967295, %s4408_s17   ;;  %p3317_p0 = scmp.ge.s32.totalorder %s4408_s17, 1  ;;  %s4408_s17 = sphi %s4475_s17, %s21_s17  }
   0x2   : > { %p337_p1 = scmp.lt.s32.totalorder %s4408_s17, 3 }
   0x4   : > { %p338_p2 = pnand %p3317_p0, %p337_p1 }
   0x5   : > { %v405_v0 = vld [vmem:[%s5000_s1] sm:$0xff] (!%p338_p2)  ;;  %v406_v1 = vld [vmem:[%s5000_s1 + $0x8] sm:$0xff] (!%p338_p2)  ;;  %v3338_v2 = vld [vmem:[%s5000_s1 + $0x18] sm:$0xff] (!%p338_p2)  ;;  %p377_p3 = scmp.lt.s32.totalorder (!%p338_p2), %s3313_s18, 1  ;;  %vm408_vm0 = vcmask (!%p338_p2), 195584   ;;  %vm576_vm1 = vcmask (!%p338_p2), 785408  }
   0x6   : > { %341 = sbr.rel (%p338_p2) target bundleno = 1923 (0x783), region = 64  ;;  %v4155_v3 = vpack.c.bf16 (!%p338_p2), %v406_v1, %v405_v0  ;;  %v3339_v4 = vld [vmem:[%s5000_s1 + $0x20] sm:$0xff] (!%p338_p2)  ;;  %v407_v6 = vld [vmem:[%s5000_s1 + $0x10] sm:$0xff] (!%p338_p2)  ;;  %v3340_v7 = vld [vmem:[%s5000_s1 + $0x28] sm:$0xff] (!%p338_p2)  ;;  %v4410_v27 = vmov (!%p338_p2), 0   ;;  %vm1257_vm2 = vcmask (!%p338_p2), 1042432  }
   0x7   : > { %v4183_v5 = vpack.c.bf16 (!%p338_p2), %v3339_v4, %v3338_v2  ;;  %v3365_v8 = vld [vmem:[%s5000_s1 + $0x30] sm:$0xff] (!%p338_p2)  ;;  %v3366_v9 = vld [vmem:[%s5000_s1 + $0x38] sm:$0xff] (!%p338_p2)  ;;  %v3367_v15 = vld [vmem:[%s5000_s1 + $0x40] sm:$0xff] (!%p338_p2)  ;;  %4400 = vset.pattern.permute.xlu0 (!%p338_p2), %v4410_v27  ;;  %4401 = vset.pattern.permute.xlu1 (!%p338_p2), %v4410_v27  ;;  %vm4411_vm3 = vmmov (!%p338_p2), 1   ;;  %vm1238_vm5 = vcmask (!%p338_p2), 89088   ;;  %vm4413_vm6 = vmmov (!%p338_p2), 0  }
   0x8   : > { %4156 = vmatprep.subr.bf16.mxu1 (!%p338_p2), %v4155_v3  ;;  %v4211_v13 = vpack.c.bf16 (!%p338_p2), %v3366_v9, %v3365_v8  ;;  %v570_v24 = vld [vmem:[%s5001_s2] sm:$0xff] (!%p338_p2)  ;;  %v401_v28 = vld [vmem:[%s5002_s3 + $0x10] sm:$0xff] (!%p338_p2)  ;;  %v400_v29 = vld [vmem:[%s5002_s3 + $0x8] sm:$0xff] (!%p338_p2)  ;;  %vm2003_vm7 = vcmask (!%p338_p2), 1043456   ;;  %vm1999_vm9 = vcmask (!%p338_p2), 359424   ;;  %vm2539_vm10 = vcmask (!%p338_p2), 1041408  }
   0x9   : > { %4158 = vmatpush3.bf16.msra.mxu1 (!%p338_p2), %v4155_v3  ;;  %4184 = vmatprep.subr.bf16.mxu0 (!%p338_p2), %v4183_v5  ;;  %v3380_v25 = vld [vmem:[%s5001_s2 + $0x60] sm:$0xff] (!%p338_p2)  ;;  %v402_v30 = vld [vmem:[%s5002_s3 + $0x18] sm:$0xff] (!%p338_p2)  ;;  %v404_v32 = vld [vmem:[%s5002_s3 + $0x28] sm:$0xf] (!%p338_p2)  ;;  %vm2535_vm11 = vcmask (!%p338_p2), 15360   ;;  %vm2614_vm12 = vcmask (!%p338_p2), 64512  }
   0xa   : > { %4186 = vmatpush3.bf16.msra.mxu0 (!%p338_p2), %v4183_v5  ;;  %3737 = vmatprep.subr.mxu1 (!%p338_p2), %v407_v6  ;;  %v399_v26 = vld [vmem:[%s5002_s3] sm:$0xff] (!%p338_p2)  ;;  %v572_v8 = vld [vmem:[%s5001_s2 + $0x10] sm:$0xff] (!%p338_p2)  ;;  %vm4674_vm4 = vmpackc.low (!%p338_p2), %vm1257_vm2, %vm4411_vm3 }
   0xb   : > { %3794 = vmatprep.subr.mxu0 (!%p338_p2), %v3340_v7  ;;  %692 = vperm.xlu0 (!%p338_p2), %4400, %v399_v26   ;;  %v403_v31 = vld [vmem:[%s5002_s3 + $0x20] sm:$0xff] (!%p338_p2)  ;;  %vm4802_vm8 = vmpackc.low (!%p338_p2), %vm2003_vm7, %vm4411_vm3 }
   0xc   : > { %702 = vperm.xlu1 (!%p338_p2), %4401, %v401_v28   ;;  %v2533_v33 = vld [vmem:[%s5007_s8] sm:$0xff] (!%p338_p2) }
   0xd   : > { %s5016_s18 = smov (!%p377_p3, %s3313_s18), 1  ;;  %3738 = vmatpush3.msra.mxu1 %v407_v6  ;;  %v571_v6 = vld [vmem:[%s5001_s2 + $0x8] sm:$0xff] }
   0xe   : > { %s4386_s12 = smul.u32 96, %s5016_s18  ;;  %3795 = vmatpush3.msra.mxu0 %v3340_v7 }
   0xf   : > { %4212 = vmatprep.subr.bf16.mxu0 %v4211_v13  ;;  %697 = vperm.xlu0 %4400, %v400_v29  }
  0x10   : > { %s4515_s21 = scalar_lea.vmem %s4999_s0, %s4386_s12  ;;  %707 = vperm.xlu1 %4401, %v402_v30   ;;  %v3354_v30 = vld [vmem:[%s5001_s2 + $0x38] sm:$0xff]  ;;  %s386_s28 = scalar_lea.vmem %s5010_s11, %s4386_s12 }
  0x11   : > { %v387_v10 = vld [vmem:[%s4515_s21] sm:$0xff]  ;;  %v388_v11 = vld [vmem:[%s4515_s21 + $0x8] sm:$0xff]  ;;  %v389_v12 = vld [vmem:[%s4515_s21 + $0x10] sm:$0xff] }
  0x12   : > { %3739 = vmatprep.mubr.msk.f32.mxu1 %vm408_vm0, %v387_v10  ;;  %3796 = vmatprep.mubr.msk.f32.mxu0 %vm408_vm0, %v387_v10  ;;  %v390_v14 = vld [vmem:[%s4515_s21 + $0x18] sm:$0xff]  ;;  %v391_v16 = vld [vmem:[%s4515_s21 + $0x20] sm:$0xff]  ;;  %v392_v17 = vld [vmem:[%s4515_s21 + $0x28] sm:$0xff] }
  0x13   : > { %3740 = vmatmul.mubr.msk.f32.vlgmr.msra.gmra.mrb[0].mxu1 %vm408_vm0, %v388_v11  ;;  %3797 = vmatmul.mubr.msk.f32.vlgmr.msra.gmra.mrb[0].mxu0 %vm408_vm0, %v388_v11  ;;  %v393_v18 = vld [vmem:[%s4515_s21 + $0x30] sm:$0xff]  ;;  %v394_v19 = vld [vmem:[%s4515_s21 + $0x38] sm:$0xff]  ;;  %v395_v20 = vld [vmem:[%s4515_s21 + $0x40] sm:$0xff] }
  0x14   : > { %3742 = vmatprep.mubr.msk.f32.mxu1 %vm408_vm0, %v389_v12  ;;  %3799 = vmatprep.mubr.msk.f32.mxu0 %vm408_vm0, %v389_v12  ;;  %v396_v21 = vld [vmem:[%s4515_s21 + $0x48] sm:$0xff]  ;;  %v397_v22 = vld [vmem:[%s4515_s21 + $0x50] sm:$0xff]  ;;  %v398_v23 = vld [vmem:[%s4515_s21 + $0x58] sm:$0xff] }
  0x15   : > { %4214 = vmatpush3.bf16.msra.mxu0 %v4211_v13  ;;  %712 = vperm.xlu0 %4400, %v403_v31   ;;  %v574_v13 = vld [vmem:[%s5001_s2 + $0x20] sm:$0xff] }
  0x16   : > { %3851 = vmatprep.subr.mxu0 %v3367_v15  ;;  %717 = vperm.xlu1 %4401, %v404_v32   ;;  %v3355_v31 = vld [vmem:[%s5001_s2 + $0x40] sm:$0xff]  ;;  %v3381_v32 = vld [vmem:[%s5001_s2 + $0x68] sm:$0xff] }
  0x17   : > { %3743 = vmatmul.mubr.msk.f32.gmra.mrb[2].mxu1 %vm408_vm0, %v390_v14  ;;  %3800 = vmatmul.mubr.msk.f32.gmra.mrb[2].mxu0 %vm408_vm0, %v390_v14 }
  0x18   : > { %3745 = vmatprep.mubr.msk.f32.mxu1 %vm408_vm0, %v391_v16  ;;  %3802 = vmatprep.mubr.msk.f32.mxu0 %vm408_vm0, %v391_v16 }
  0x19   : > { %3852 = vmatpush3.msra.mxu0 %v3367_v15  ;;  %2690 = vperm.xlu0 %4400, %v2533_v33   ;;  %v3356_v33 = vld [vmem:[%s5001_s2 + $0x48] sm:$0xff] }
  0x1b   : > { %3746 = vmatmul.mubr.msk.f32.gmra.mrb[4].mxu1 %vm408_vm0, %v392_v17  ;;  %3803 = vmatmul.mubr.msk.f32.gmra.mrb[4].mxu0 %vm408_vm0, %v392_v17 }
  0x1c   : > { %3748 = vmatprep.mubr.msk.f32.mxu1 %vm408_vm0, %v393_v18  ;;  %3805 = vmatprep.mubr.msk.f32.mxu0 %vm408_vm0, %v393_v18 }
  0x1f   : > { %3749 = vmatmul.mubr.msk.f32.gmra.mrb[6].mxu1 %vm408_vm0, %v394_v19  ;;  %3806 = vmatmul.mubr.msk.f32.gmra.mrb[6].mxu0 %vm408_vm0, %v394_v19 }
  0x20   : > { %3751 = vmatprep.mubr.msk.f32.mxu1 %vm408_vm0, %v395_v20  ;;  %3808 = vmatprep.mubr.msk.f32.mxu0 %vm408_vm0, %v395_v20 }
  0x23   : > { %3752 = vmatmul.mubr.msk.f32.gmra.mrb[8].mxu1 %vm408_vm0, %v396_v21  ;;  %3809 = vmatmul.mubr.msk.f32.gmra.mrb[8].mxu0 %vm408_vm0, %v396_v21 }
  0x24   : > { %3754 = vmatprep.mubr.msk.f32.mxu1 %vm408_vm0, %v397_v22  ;;  %3811 = vmatprep.mubr.msk.f32.mxu0 %vm408_vm0, %v397_v22 }
  0x27   : > { %3755 = vmatmul.mubr.msk.f32.gmra.mrb[10].mxu1 %vm408_vm0, %v398_v23  ;;  %3812 = vmatmul.mubr.msk.f32.gmra.mrb[10].mxu0 %vm408_vm0, %v398_v23 }
  0x28   : > { %3853 = vmatprep.mubr.msk.f32.mxu0 %vm408_vm0, %v387_v10  ;;  %3781 = vmatprep.mubr.msk.f32.mxu1 %vm576_vm1, %v570_v24 }
  0x2b   : > { %3854 = vmatmul.mubr.msk.f32.vlgmr.msra.gmra.mrb[12].mxu0 %vm408_vm0, %v388_v11  ;;  %v573_v11 = vld [vmem:[%s5001_s2 + $0x18] sm:$0xff] }
  0x2c   : > { %3856 = vmatprep.mubr.msk.f32.mxu0 %vm408_vm0, %v389_v12 }
  0x2f   : > { %3857 = vmatmul.mubr.msk.f32.gmra.mrb[14].mxu0 %vm408_vm0, %v390_v14 }
  0x30   : > { %3859 = vmatprep.mubr.msk.f32.mxu0 %vm408_vm0, %v391_v16  ;;  %v575_v16 = vld [vmem:[%s5001_s2 + $0x28] sm:$0xf] }
  0x33   : > { %3860 = vmatmul.mubr.msk.f32.gmra.mrb[16].mxu0 %vm408_vm0, %v392_v17 }
  0x34   : > { %3862 = vmatprep.mubr.msk.f32.mxu0 %vm408_vm0, %v393_v18  ;;  %v3353_v18 = vld [vmem:[%s5001_s2 + $0x30] sm:$0xff] }
  0x37   : > { %3863 = vmatmul.mubr.msk.f32.gmra.mrb[18].mxu0 %vm408_vm0, %v394_v19 }
  0x38   : > { %3865 = vmatprep.mubr.msk.f32.mxu0 %vm408_vm0, %v395_v20 }
  0x3b   : > { %3866 = vmatmul.mubr.msk.f32.gmra.mrb[20].mxu0 %vm408_vm0, %v396_v21 }
  0x3c   : > { %3868 = vmatprep.mubr.msk.f32.mxu0 %vm408_vm0, %v397_v22 }
  0x3f   : > { %3869 = vmatmul.mubr.msk.f32.gmra.mrb[22].mxu0 %vm408_vm0, %v398_v23 }
  0x40   : > { %3895 = vmatprep.mubr.msk.f32.mxu0 %vm576_vm1, %v3380_v25 }
  0xe6   : > { %v3741_v34 = vpop.f32.mrb[0].mxu1  ;;  %v3798_v37 = vpop.f32.mrb[0].mxu0 }
  0xe7   : > { %v511_v35 = vpop.f32.mrb[1].mxu1  ;;  %v796_v38 = vpop.f32.mrb[1].mxu0 }
  0xe8   : > { %v4159_v36 = vpack.c.bf16 %v3741_v34, %v511_v35  ;;  %v4187_v40 = vpack.c.bf16 %v3798_v37, %v796_v38  ;;  %v3357_v34 = vld [vmem:[%s5001_s2 + $0x50] sm:$0xff]  ;;  %v3358_v35 = vld [vmem:[%s5001_s2 + $0x58] sm:$0xf]  ;;  %v3384_v38 = vld [vmem:[%s5001_s2 + $0x80] sm:$0xff] }
  0xe9   : > { %v3383_v37 = vld [vmem:[%s5001_s2 + $0x78] sm:$0xff] }
  0xea   : > { %v3744_v39 = vpop.f32.mrb[2].mxu1  ;;  %4160 = vmatprep.subr.bf16.mxu1 %v4159_v36  ;;  %v3801_v43 = vpop.f32.mrb[2].mxu0 }
  0xeb   : > { %v521_v41 = vpop.f32.mrb[3].mxu1  ;;  %4162 = vmatpush3.bf16.msra.mxu1 %v4159_v36  ;;  %v806_v44 = vpop.f32.mrb[3].mxu0  ;;  %v3382_v36 = vld [vmem:[%s5001_s2 + $0x70] sm:$0xff] }
  0xec   : > { %v4163_v42 = vpack.c.bf16 %v3744_v39, %v521_v41  ;;  %v4191_v46 = vpack.c.bf16 %v3801_v43, %v806_v44  ;;  %v3385_v39 = vld [vmem:[%s5001_s2 + $0x88] sm:$0xf]  ;;  %v3400_v44 = vld [vmem:[%s5003_s4 + $0x18] sm:$0x7] }
  0xed   : > { %v1237_v41 = vld [vmem:[%s5003_s4 + $0x8] sm:$0x7] }
  0xee   : > { %v3747_v45 = vpop.f32.mrb[4].mxu1  ;;  %4164 = vmatprep.subr.bf16.mxu1 %v4163_v42  ;;  %v3804_v49 = vpop.f32.mrb[4].mxu0 }
  0xef   : > { %v531_v47 = vpop.f32.mrb[5].mxu1  ;;  %4166 = vmatpush3.bf16.msra.mxu1 %v4163_v42  ;;  %v816_v50 = vpop.f32.mrb[5].mxu0  ;;  %v3399_v42 = vld [vmem:[%s5003_s4 + $0x10] sm:$0xff] }
  0xf0   : > { %v4167_v48 = vpack.c.bf16 %v3747_v45, %v531_v47  ;;  %v4195_v52 = vpack.c.bf16 %v3804_v49, %v816_v50  ;;  %v3408_v47 = vld [vmem:[%s5003_s4 + $0x20] sm:$0xff]  ;;  %v3417_v50 = vld [vmem:[%s5003_s4 + $0x30] sm:$0xff] }
  0xf2   : > { %v3750_v51 = vpop.f32.mrb[6].mxu1  ;;  %4168 = vmatprep.subr.bf16.mxu1 %v4167_v48  ;;  %v3807_v55 = vpop.f32.mrb[6].mxu0 }
  0xf3   : > { %v541_v53 = vpop.f32.mrb[7].mxu1  ;;  %4170 = vmatpush3.bf16.msra.mxu1 %v4167_v48  ;;  %v826_v56 = vpop.f32.mrb[7].mxu0  ;;  %v3409_v48 = vld [vmem:[%s5003_s4 + $0x28] sm:$0x7] }
  0xf4   : > { %v4171_v54 = vpack.c.bf16 %v3750_v51, %v541_v53  ;;  %v4199_v58 = vpack.c.bf16 %v3807_v55, %v826_v56  ;;  %v4251_v49 = vpack.c.bf16 %v3409_v48, %v3408_v47  ;;  %v3418_v51 = vld [vmem:[%s5003_s4 + $0x38] sm:$0x7]  ;;  %v693_v53 = vpop.permute.xlu0 %692 }
  0xf6   : > { %v3753_v57 = vpop.f32.mrb[8].mxu1  ;;  %4172 = vmatprep.subr.bf16.mxu1 %v4171_v54  ;;  %v3810_v61 = vpop.f32.mrb[8].mxu0 }
  0xf7   : > { %v551_v59 = vpop.f32.mrb[9].mxu1  ;;  %4174 = vmatpush3.bf16.msra.mxu1 %v4171_v54  ;;  %v836_v62 = vpop.f32.mrb[9].mxu0 }
  0xf8   : > { %v4175_v60 = vpack.c.bf16 %v3753_v57, %v551_v59  ;;  %v4203_v0 = vpack.c.bf16 %v3810_v61, %v836_v62  ;;  %v698_v54 = vpop.permute.xlu0 %697  ;;  %v3427_v61 = vld [vmem:[%s5003_s4 + $0x48] sm:$0x7]  ;;  %v3435_v62 = vld [vmem:[%s5003_s4 + $0x50] sm:$0xff] }
  0xfa   : > { %v3756_v63 = vpop.f32.mrb[10].mxu1  ;;  %4176 = vmatprep.subr.bf16.mxu1 %v4175_v60  ;;  %v3813_v3 = vpop.f32.mrb[10].mxu0 }
  0xfb   : > { %v561_v1 = vpop.f32.mrb[11].mxu1  ;;  %4178 = vmatpush3.bf16.msra.mxu1 %v4175_v60  ;;  %v846_v4 = vpop.f32.mrb[11].mxu0 }
  0xfc   : > { %v4179_v2 = vpack.c.bf16 %v3756_v63, %v561_v1  ;;  %v4207_v5 = vpack.c.bf16 %v3813_v3, %v846_v4  ;;  %v3436_v63 = vld [vmem:[%s5003_s4 + $0x58] sm:$0x7] }
  0xfd   : > { %v4269_v4 = vpack.c.bf16 %v3436_v63, %v3435_v62 }
  0xfe   : > { %4180 = vmatprep.subr.bf16.mxu1 %v4179_v2  ;;  %v3855_v7 = vpop.f32.mrb[12].mxu0 }
  0xff   : > { %4182 = vmatpush3.bf16.msra.mxu1 %v4179_v2  ;;  %v1051_v9 = vpop.f32.mrb[13].mxu0 }
 0x100   : > { %4188 = vmatprep.subr.bf16.mxu1 %v4187_v40  ;;  %v4215_v10 = vpack.c.bf16 %v3855_v7, %v1051_v9 }
 0x102   : > { %3782 = vmatmul.mubr.msk.f32.vlgmr.msra.gmra.mrb[12].mxu1 %vm576_vm1, %v571_v6  ;;  %v3858_v12 = vpop.f32.mrb[14].mxu0  ;;  %4216 = vmatprep.subr.bf16.mxu0 %v4215_v10 }
 0x103   : > { %4190 = vmatpush3.bf16.msra.mxu1 %v4187_v40  ;;  %3784 = vmatprep.mubr.msk.f32.mxu1 %vm576_vm1, %v572_v8  ;;  %v1061_v14 = vpop.f32.mrb[15].mxu0  ;;  %v1236_v40 = vld [vmem:[%s5003_s4] sm:$0xff] }
 0x104   : > { %4192 = vmatprep.subr.bf16.mxu1 %v4191_v46  ;;  %4218 = vmatpush3.bf16.msra.mxu0 %v4215_v10  ;;  %v4219_v15 = vpack.c.bf16 %v3858_v12, %v1061_v14  ;;  %v4239_v43 = vpack.c.bf16 %v1237_v41, %v1236_v40  ;;  %v713_v12 = vpop.permute.xlu0 %712 }
 0x106   : > { %3785 = vmatmul.mubr.msk.f32.gmra.mrb[14].mxu1 %vm576_vm1, %v573_v11  ;;  %v3861_v17 = vpop.f32.mrb[16].mxu0  ;;  %4220 = vmatprep.subr.bf16.mxu0 %v4219_v15 }
 0x107   : > { %4194 = vmatpush3.bf16.msra.mxu1 %v4191_v46  ;;  %3787 = vmatprep.mubr.msk.f32.mxu1 %vm576_vm1, %v574_v13  ;;  %v1071_v19 = vpop.f32.mrb[17].mxu0  ;;  %v4245_v46 = vpack.c.bf16 %v3400_v44, %v3399_v42 }
 0x108   : > { %4196 = vmatprep.subr.bf16.mxu1 %v4195_v52  ;;  %4222 = vmatpush3.bf16.msra.mxu0 %v4219_v15  ;;  %v4223_v20 = vpack.c.bf16 %v3861_v17, %v1071_v19  ;;  %v3444_v17 = vld [vmem:[%s5003_s4 + $0x60] sm:$0xff] }
 0x10a   : > { %3788 = vmatmul.mubr.msk.f32.gmra.mrb[16].mxu1 %vm576_vm1, %v575_v16  ;;  %v3864_v21 = vpop.f32.mrb[18].mxu0  ;;  %4224 = vmatprep.subr.bf16.mxu0 %v4223_v20 }
 0x10b   : > { %4198 = vmatpush3.bf16.msra.mxu1 %v4195_v52  ;;  %3838 = vmatprep.mubr.msk.f32.mxu1 %vm576_vm1, %v3353_v18  ;;  %v1081_v22 = vpop.f32.mrb[19].mxu0  ;;  %v4257_v52 = vpack.c.bf16 %v3418_v51, %v3417_v50  ;;  %v3445_v18 = vld [vmem:[%s5003_s4 + $0x68] sm:$0x7] }
 0x10c   : > { %4200 = vmatprep.subr.bf16.mxu1 %v4199_v58  ;;  %4226 = vmatpush3.bf16.msra.mxu0 %v4223_v20  ;;  %v4227_v23 = vpack.c.bf16 %v3864_v21, %v1081_v22  ;;  %v4275_v19 = vpack.c.bf16 %v3445_v18, %v3444_v17  ;;  %v4414_v21 = vmov 0.0  }
 0x10e   : > { %v3867_v24 = vpop.f32.mrb[20].mxu0  ;;  %4228 = vmatprep.subr.bf16.mxu0 %v4227_v23 }
 0x10f   : > { %4202 = vmatpush3.bf16.msra.mxu1 %v4199_v58  ;;  %v1091_v25 = vpop.f32.mrb[21].mxu0  ;;  %v3426_v58 = vld [vmem:[%s5003_s4 + $0x40] sm:$0xff] }
 0x110   : > { %4204 = vmatprep.subr.bf16.mxu1 %v4203_v0  ;;  %4230 = vmatpush3.bf16.msra.mxu0 %v4227_v23  ;;  %v4231_v26 = vpack.c.bf16 %v3867_v24, %v1091_v25  ;;  %v4263_v3 = vpack.c.bf16 %v3427_v61, %v3426_v58 }
 0x112   : > { %v3870_v27 = vpop.f32.mrb[22].mxu0  ;;  %4232 = vmatprep.subr.bf16.mxu0 %v4231_v26 }
 0x113   : > { %4206 = vmatpush3.bf16.msra.mxu1 %v4203_v0  ;;  %v1101_v28 = vpop.f32.mrb[23].mxu0 }
 0x114   : > { %4208 = vmatprep.subr.bf16.mxu1 %v4207_v5  ;;  %4234 = vmatpush3.bf16.msra.mxu0 %v4231_v26  ;;  %v4235_v29 = vpack.c.bf16 %v3870_v27, %v1101_v28 }
 0x116   : > { %4236 = vmatprep.subr.bf16.mxu0 %v4235_v29 }
 0x117   : > { %4210 = vmatpush3.bf16.msra.mxu1 %v4207_v5  ;;  %v703_v5 = vpop.permute.xlu1 %702 }
 0x118   : > { %4351 = vmatprep.subr.bf16.mxu1 %v4215_v10  ;;  %4238 = vmatpush3.bf16.msra.mxu0 %v4235_v29 }
 0x119   : > { %4241 = vmatprep.subr.msk.bf16.mxu0 %vm4674_vm4, %v4239_v43 }
 0x11a   : > { %3839 = vmatmul.mubr.msk.f32.vlgmr.msra.gmra.mrb[12].mxu1 %vm576_vm1, %v3354_v30 }
 0x11b   : > { %4357 = vmatpush3.bf16.msra.mxu1 %v4215_v10  ;;  %3841 = vmatprep.mubr.msk.f32.mxu1 %vm576_vm1, %v3355_v31  ;;  %v708_v6 = vpop.permute.xlu1 %707 }
 0x11c   : > { %4352 = vmatprep.subr.bf16.mxu1 %v4219_v15  ;;  %3896 = vmatmul.mubr.msk.f32.vlgmr.msra.gmra.mrb[24].mxu0 %vm576_vm1, %v3381_v32 }
 0x11d   : > { %4244 = vmatpush3.bf16.msk.msra.mxu0 %vm4674_vm4, %v4239_v43 }
 0x11e   : > { %3842 = vmatmul.mubr.msk.f32.gmra.mrb[14].mxu1 %vm576_vm1, %v3356_v33  ;;  %4253 = vmatprep.subr.msk.bf16.mxu0 %vm4674_vm4, %v4251_v49 }
 0x11f   : > { %4358 = vmatpush3.bf16.msra.mxu1 %v4219_v15  ;;  %3844 = vmatprep.mubr.msk.f32.mxu1 %vm576_vm1, %v3357_v34  ;;  %v718_v14 = vpop.permute.xlu1 %717 }
 0x120   : > { %4353 = vmatprep.subr.bf16.mxu1 %v4223_v20 }
 0x122   : > { %3845 = vmatmul.mubr.msk.f32.gmra.mrb[16].mxu1 %vm576_vm1, %v3358_v35 }
 0x123   : > { %4359 = vmatpush3.bf16.msra.mxu1 %v4223_v20  ;;  %3898 = vmatprep.mubr.msk.f32.mxu1 %vm576_vm1, %v3382_v36  ;;  %v4412_v20 = vmov 0.0|0.0  }
 0x124   : > { %4354 = vmatprep.subr.bf16.mxu1 %v4227_v23 }
 0x127   : > { %4360 = vmatpush3.bf16.msra.mxu1 %v4227_v23 }
 0x128   : > { %4355 = vmatprep.subr.bf16.mxu1 %v4231_v26 }
 0x12b   : > { %4361 = vmatpush3.bf16.msra.mxu1 %v4231_v26 }
 0x12c   : > { %4356 = vmatprep.subr.bf16.mxu1 %v4235_v29 }
 0x12f   : > { %4362 = vmatpush3.bf16.msra.mxu1 %v4235_v29 }
 0x130   : > { %4247 = vmatprep.subr.msk.bf16.mxu1 %vm4674_vm4, %v4245_v46 }
 0x132   : > { %3899 = vmatmul.mubr.msk.f32.vlgmr.msra.gmra.mrb[14].mxu1 %vm576_vm1, %v3383_v37 }
 0x133   : > { %3901 = vmatprep.mubr.msk.f32.mxu1 %vm576_vm1, %v3384_v38  ;;  %4250 = vmatpush3.bf16.msk.msra.mxu1 %vm4674_vm4, %v4245_v46 }
 0x134   : > { %4259 = vmatprep.subr.msk.bf16.mxu1 %vm4674_vm4, %v4257_v52 }
 0x136   : > { %3902 = vmatmul.mubr.msk.f32.gmra.mrb[16].mxu1 %vm576_vm1, %v3385_v39 }
 0x1ed   : > { %v3840_v55 = vpop.f32.mrb[12].mxu1 }
 0x1ee   : > { %v4363_v56 = vadd.f32 %v3840_v55, %v698_v54  ;;  %v946_v57 = vpop.f32.mrb[13].mxu1 }
 0x1ef   : > { %v4365_v59 = vadd.f32 %v946_v57, %v693_v53  ;;  %v3897_v60 = vpop.f32.mrb[24].mxu0 }
 0x1f0   : > { %v4714_v0 = vadd.f32 %v4363_v56, %v3897_v60  ;;  %v1201_v1 = vpop.f32.mrb[25].mxu0 }
 0x1f1   : > { %v4366_v2 = vadd.f32 %v4365_v59, %v1201_v1 }
 0x1f3   : > { %3908 = vmatprep.mubr.msk.f32.mxu0 %vm1238_vm5, %v4366_v2  ;;  %3921 = vmatprep.mubr.msk.f32.mxu1 %vm1238_vm5, %v4366_v2 }
 0x1f4   : > { %3909 = vmatmul.mubr.msk.f32.vlgmr.msra.gmra.mrb[26].mxu0 %vm1238_vm5, %v4714_v0  ;;  %3922 = vmatmul.mubr.msk.f32.vlgmr.msra.gmra.mrb[18].mxu1 %vm1238_vm5, %v4714_v0 }
 0x1f5   : > { %4256 = vmatpush3.bf16.msk.msra.mxu0 %vm4674_vm4, %v4251_v49  ;;  %4262 = vmatpush3.bf16.msk.msra.mxu1 %vm4674_vm4, %v4257_v52 }
 0x1f6   : > { %4265 = vmatprep.subr.msk.bf16.mxu0 %vm4674_vm4, %v4263_v3  ;;  %4271 = vmatprep.subr.msk.bf16.mxu1 %vm4674_vm4, %v4269_v4 }
 0x205   : > { %v3900_v7 = vpop.f32.mrb[14].mxu1 }
 0x206   : > { %v1211_v8 = vpop.f32.mrb[15].mxu1  ;;  %v4367_v10 = vadd.f32 %v3900_v7, %v708_v6 }
 0x207   : > { %v4368_v9 = vadd.f32 %v1211_v8, %v703_v5 }
 0x209   : > { %v3903_v11 = vpop.f32.mrb[16].mxu1  ;;  %3911 = vmatprep.mubr.msk.f32.mxu0 %vm1238_vm5, %v4368_v9  ;;  %3924 = vmatprep.mubr.msk.f32.mxu1 %vm1238_vm5, %v4368_v9 }
 0x20a   : > { %v1221_v13 = vpop.f32.mrb[17].mxu1  ;;  %3912 = vmatmul.mubr.msk.f32.gmra.mrb[28].mxu0 %vm1238_vm5, %v4367_v10  ;;  %3925 = vmatmul.mubr.msk.f32.gmra.mrb[20].mxu1 %vm1238_vm5, %v4367_v10  ;;  %v4369_v16 = vadd.f32 %v3903_v11, %v718_v14 }
 0x20b   : > { %v4370_v15 = vadd.f32 %v1221_v13, %v713_v12 }
 0x20d   : > { %3914 = vmatprep.mubr.msk.f32.mxu0 %vm1238_vm5, %v4370_v15  ;;  %3927 = vmatprep.mubr.msk.f32.mxu1 %vm1238_vm5, %v4370_v15 }
 0x20e   : > { %3915 = vmatmul.mubr.msk.f32.gmra.mrb[30].mxu0 %vm1238_vm5, %v4369_v16  ;;  %3928 = vmatmul.mubr.msk.f32.gmra.mrb[22].mxu1 %vm1238_vm5, %v4369_v16 }
 0x20f   : > { %3934 = vmatprep.mubr.msk.f32.mxu0 %vm1238_vm5, %v4366_v2  ;;  %3947 = vmatprep.mubr.msk.f32.mxu1 %vm1238_vm5, %v4366_v2 }
 0x212   : > { %3935 = vmatmul.mubr.msk.f32.vlgmr.msra.gmra.mrb[32].mxu0 %vm1238_vm5, %v4714_v0  ;;  %3948 = vmatmul.mubr.msk.f32.vlgmr.msra.gmra.mrb[24].mxu1 %vm1238_vm5, %v4714_v0 }
 0x213   : > { %3937 = vmatprep.mubr.msk.f32.mxu0 %vm1238_vm5, %v4368_v9  ;;  %3950 = vmatprep.mubr.msk.f32.mxu1 %vm1238_vm5, %v4368_v9 }
 0x214   : > { %4268 = vmatpush3.bf16.msk.msra.mxu0 %vm4674_vm4, %v4263_v3  ;;  %4274 = vmatpush3.bf16.msk.msra.mxu1 %vm4674_vm4, %v4269_v4 }
 0x215   : > { %4277 = vmatprep.subr.msk.bf16.mxu0 %vm4674_vm4, %v4275_v19  ;;  %4281 = vmatprep.subr.bf16.mxu1 %v4412_v20 }
 0x216   : > { %3938 = vmatmul.mubr.msk.f32.gmra.mrb[34].mxu0 %vm1238_vm5, %v4367_v10  ;;  %3951 = vmatmul.mubr.msk.f32.gmra.mrb[26].mxu1 %vm1238_vm5, %v4367_v10 }
 0x217   : > { %3940 = vmatprep.mubr.msk.f32.mxu0 %vm1238_vm5, %v4370_v15  ;;  %3953 = vmatprep.mubr.msk.f32.mxu1 %vm1238_vm5, %v4370_v15 }
 0x21a   : > { %3941 = vmatmul.mubr.msk.f32.gmra.mrb[36].mxu0 %vm1238_vm5, %v4369_v16  ;;  %3954 = vmatmul.mubr.msk.f32.gmra.mrb[28].mxu1 %vm1238_vm5, %v4369_v16 }
 0x21b   : > { %3960 = vmatprep.mubr.msk.f32.mxu0 %vm1238_vm5, %v4366_v2  ;;  %3973 = vmatprep.mubr.msk.f32.mxu1 %vm1238_vm5, %v4366_v2 }
 0x21e   : > { %3961 = vmatmul.mubr.msk.f32.vlgmr.msra.gmra.mrb[38].mxu0 %vm1238_vm5, %v4714_v0  ;;  %3974 = vmatmul.mubr.msk.f32.vlgmr.msra.gmra.mrb[30].mxu1 %vm1238_vm5, %v4714_v0 }
 0x21f   : > { %3963 = vmatprep.mubr.msk.f32.mxu0 %vm1238_vm5, %v4368_v9  ;;  %3976 = vmatprep.mubr.msk.f32.mxu1 %vm1238_vm5, %v4368_v9 }
 0x220   : > { %4280 = vmatpush3.bf16.msk.msra.mxu0 %vm4674_vm4, %v4275_v19 }
 0x221   : > { %4291 = vmatprep.subr.bf16.mxu0 %v4412_v20 }
 0x222   : > { %3964 = vmatmul.mubr.msk.f32.gmra.mrb[40].mxu0 %vm1238_vm5, %v4367_v10  ;;  %3977 = vmatmul.mubr.msk.f32.gmra.mrb[32].mxu1 %vm1238_vm5, %v4367_v10 }
 0x223   : > { %3966 = vmatprep.mubr.msk.f32.mxu0 %vm1238_vm5, %v4370_v15  ;;  %3979 = vmatprep.mubr.msk.f32.mxu1 %vm1238_vm5, %v4370_v15 }
 0x226   : > { %3967 = vmatmul.mubr.msk.f32.gmra.mrb[42].mxu0 %vm1238_vm5, %v4369_v16  ;;  %3980 = vmatmul.mubr.msk.f32.gmra.mrb[34].mxu1 %vm1238_vm5, %v4369_v16 }
 0x227   : > { %3986 = vmatprep.mubr.msk.f32.mxu0 %vm1238_vm5, %v4366_v2  ;;  %4007 = vmatprep.mubr.msk.f32.mxu1 %vm4413_vm6, %v4414_v21 }
 0x22a   : > { %3987 = vmatmul.mubr.msk.f32.vlgmr.msra.gmra.mrb[44].mxu0 %vm1238_vm5, %v4714_v0 }
 0x22b   : > { %3989 = vmatprep.mubr.msk.f32.mxu0 %vm1238_vm5, %v4368_v9 }
 0x22e   : > { %3990 = vmatmul.mubr.msk.f32.gmra.mrb[46].mxu0 %vm1238_vm5, %v4367_v10 }
 0x22f   : > { %3992 = vmatprep.mubr.msk.f32.mxu0 %vm1238_vm5, %v4370_v15 }
 0x232   : > { %3993 = vmatmul.mubr.msk.f32.gmra.mrb[48].mxu0 %vm1238_vm5, %v4369_v16 }
 0x233   : > { %4022 = vmatprep.mubr.msk.f32.mxu0 %vm4413_vm6, %v4414_v21 }
 0x2c7   : > { %v3910_v22 = vpop.f32.mrb[26].mxu0  ;;  %v3923_v23 = vpop.f32.mrb[18].mxu1 }
 0x2c8   : > { %v1458_v24 = vmax.f32 %v3910_v22, %v3923_v23  ;;  %v1327_v25 = vpop.f32.mrb[27].mxu0  ;;  %v1428_v26 = vpop.f32.mrb[19].mxu1 }
 0x2c9   : > { %v1457_v27 = vmax.f32 %v1327_v25, %v1428_v26 }
 0x2dd   : > { %v3913_v28 = vpop.f32.mrb[28].mxu0  ;;  %v3926_v29 = vpop.f32.mrb[20].mxu1 }
 0x2de   : > { %v1460_v30 = vmax.f32 %v3913_v28, %v3926_v29  ;;  %v1337_v31 = vpop.f32.mrb[29].mxu0  ;;  %v1438_v32 = vpop.f32.mrb[21].mxu1 }
 0x2df   : > { %v1459_v33 = vmax.f32 %v1337_v31, %v1438_v32 }
 0x2e1   : > { %v3916_v34 = vpop.f32.mrb[30].mxu0  ;;  %v3929_v35 = vpop.f32.mrb[22].mxu1 }
 0x2e2   : > { %v1462_v36 = vmax.f32 %v3916_v34, %v3929_v35  ;;  %v1347_v37 = vpop.f32.mrb[31].mxu0  ;;  %v1448_v38 = vpop.f32.mrb[23].mxu1 }
 0x2e3   : > { %v1461_v39 = vmax.f32 %v1347_v37, %v1448_v38 }
 0x2e5   : > { %v3936_v40 = vpop.f32.mrb[32].mxu0  ;;  %v3949_v41 = vpop.f32.mrb[24].mxu1 }
 0x2e6   : > { %v1565_v42 = vmax.f32 %v1458_v24, %v3936_v40  ;;  %v1535_v43 = vpop.f32.mrb[33].mxu0  ;;  %v1642_v44 = vpop.f32.mrb[25].mxu1 }
 0x2e7   : > { %v1564_v45 = vmax.f32 %v1457_v27, %v1535_v43  ;;  %v3455_v43 = vld [vmem:[%s5004_s5 + $0x8] sm:$0xff] }
 0x2e8   : > { %v1672_v46 = vmax.f32 %v1565_v42, %v3949_v41  ;;  %v1998_v42 = vld [vmem:[%s5004_s5] sm:$0xff] }
 0x2e9   : > { %v1671_v47 = vmax.f32 %v1564_v45, %v1642_v44  ;;  %v3939_v48 = vpop.f32.mrb[34].mxu0  ;;  %v3952_v49 = vpop.f32.mrb[26].mxu1  ;;  %v3458_v44 = vld [vmem:[%s5004_s5 + $0x10] sm:$0xff]  ;;  %v3461_v45 = vld [vmem:[%s5004_s5 + $0x18] sm:$0xff] }
 0x2ea   : > { %v1567_v50 = vmax.f32 %v1460_v30, %v3939_v48  ;;  %v1545_v51 = vpop.f32.mrb[35].mxu0  ;;  %v1652_v52 = vpop.f32.mrb[27].mxu1  ;;  %v3470_v48 = vld [vmem:[%s5004_s5 + $0x30] sm:$0xff] }
 0x2eb   : > { %v1566_v53 = vmax.f32 %v1459_v33, %v1545_v51 }
 0x2ec   : > { %v1674_v54 = vmax.f32 %v1567_v50, %v3952_v49  ;;  %v2534_v49 = vld [vmem:[%s5005_s6] sm:$0x3] }
 0x2ed   : > { %v1673_v55 = vmax.f32 %v1566_v53, %v1652_v52  ;;  %v3942_v56 = vpop.f32.mrb[36].mxu0  ;;  %v3955_v57 = vpop.f32.mrb[28].mxu1 }
 0x2ee   : > { %v1569_v58 = vmax.f32 %v1462_v36, %v3942_v56  ;;  %v1555_v59 = vpop.f32.mrb[37].mxu0  ;;  %v1662_v60 = vpop.f32.mrb[29].mxu1 }
 0x2ef   : > { %v1568_v61 = vmax.f32 %v1461_v39, %v1555_v59 }
 0x2f0   : > { %v1676_v62 = vmax.f32 %v1569_v58, %v3955_v57 }
 0x2f1   : > { %v1675_v63 = vmax.f32 %v1568_v61, %v1662_v60  ;;  %v3962_v0 = vpop.f32.mrb[38].mxu0  ;;  %v3975_v1 = vpop.f32.mrb[30].mxu1 }
 0x2f2   : > { %v1779_v2 = vmax.f32 %v1672_v46, %v3962_v0  ;;  %v1749_v3 = vpop.f32.mrb[39].mxu0  ;;  %v1856_v4 = vpop.f32.mrb[31].mxu1  ;;  %v3464_v46 = vld [vmem:[%s5004_s5 + $0x20] sm:$0xff] }
 0x2f3   : > { %v1778_v5 = vmax.f32 %v1671_v47, %v1749_v3  ;;  %v3467_v47 = vld [vmem:[%s5004_s5 + $0x28] sm:$0xff] }
 0x2f4   : > { %v1886_v6 = vmax.f32 %v1779_v2, %v3975_v1 }
 0x2f5   : > { %v1885_v7 = vmax.f32 %v1778_v5, %v1856_v4  ;;  %v3965_v8 = vpop.f32.mrb[40].mxu0  ;;  %v3978_v9 = vpop.f32.mrb[32].mxu1 }
 0x2f6   : > { %v1781_v10 = vmax.f32 %v1674_v54, %v3965_v8  ;;  %v1759_v11 = vpop.f32.mrb[41].mxu0  ;;  %v1866_v12 = vpop.f32.mrb[33].mxu1 }
 0x2f7   : > { %v1780_v13 = vmax.f32 %v1673_v55, %v1759_v11 }
 0x2f8   : > { %v1888_v14 = vmax.f32 %v1781_v10, %v3978_v9 }
 0x2f9   : > { %v1887_v15 = vmax.f32 %v1780_v13, %v1866_v12  ;;  %v3968_v16 = vpop.f32.mrb[42].mxu0  ;;  %v3981_v17 = vpop.f32.mrb[34].mxu1 }
 0x2fa   : > { %v1783_v18 = vmax.f32 %v1676_v62, %v3968_v16  ;;  %v1769_v19 = vpop.f32.mrb[43].mxu0  ;;  %v1876_v22 = vpop.f32.mrb[35].mxu1  ;;  %v2996_v16 = vld [vmem:[%s5008_s9] sm:$0x3] }
 0x2fb   : > { %v1782_v23 = vmax.f32 %v1675_v63, %v1769_v19 }
 0x2fc   : > { %v1890_v24 = vmax.f32 %v1783_v18, %v3981_v17  ;;  %v2691_v17 = vpop.permute.xlu0 %2690 }
 0x2fd   : > { %v1889_v25 = vmax.f32 %v1782_v23, %v1876_v22  ;;  %v3988_v26 = vpop.f32.mrb[44].mxu0 }
 0x2fe   : > { %v1993_v27 = vmax.f32 %v1886_v6, %v3988_v26  ;;  %v1963_v28 = vpop.f32.mrb[45].mxu0  ;;  %v3481_v6 = vld [vmem:[%s5005_s6 + $0x4] sm:$0x3]  ;;  %v3075_v26 = vld [vmem:[%s5009_s10 + $0x10] sm:$0xff] }
 0x2ff   : > { %v1992_v29 = vmax.f32 %v1885_v7, %v1963_v28  ;;  %v2613_v7 = vld [vmem:[%s5006_s7] sm:$0xff] }
 0x300   : > { %v3077_v28 = vld [vmem:[%s5009_s10 + $0x20] sm:$0xff] }
 0x301   : > { %v4793_v30 = vpack.c.bf16 %v1993_v27, %v1992_v29  ;;  %v3991_v31 = vpop.f32.mrb[46].mxu0  ;;  %v3076_v27 = vld [vmem:[%s5009_s10 + $0x18] sm:$0xff]  ;;  %v3078_v29 = vld [vmem:[%s5009_s10 + $0x28] sm:$0xff] }
 0x302   : > { %v1995_v32 = vmax.f32 %v1888_v14, %v3991_v31  ;;  %v1973_v33 = vpop.f32.mrb[47].mxu0  ;;  %v3479_v14 = vld [vmem:[%s5006_s7 + $0x8] sm:$0xff]  ;;  %v3080_v31 = vld [vmem:[%s5009_s10 + $0x38] sm:$0xff] }
 0x303   : > { %v1994_v34 = vmax.f32 %v1887_v15, %v1973_v33  ;;  %4283 = vmatpush3.bf16.msra.mxu1 %v4793_v30  ;;  %4293 = vmatpush3.bf16.msra.mxu0 %v4793_v30  ;;  %v3484_v15 = vld [vmem:[%s5006_s7 + $0x10] sm:$0xff]  ;;  %v3082_v33 = vld [vmem:[%s5009_s10 + $0x48] sm:$0xff] }
 0x304   : > { %4284 = vmatprep.subr.bf16.mxu1 %v4412_v20  ;;  %4294 = vmatprep.subr.bf16.mxu0 %v4412_v20 }
 0x305   : > { %v4285_v35 = vpack.c.bf16 %v1995_v32, %v1994_v34  ;;  %v3994_v36 = vpop.f32.mrb[48].mxu0  ;;  %v3081_v32 = vld [vmem:[%s5009_s10 + $0x40] sm:$0xff]  ;;  %v3083_v34 = vld [vmem:[%s5009_s10 + $0x50] sm:$0xff] }
 0x306   : > { %v1997_v37 = vmax.f32 %v1890_v24, %v3994_v36  ;;  %v1983_v38 = vpop.f32.mrb[49].mxu0  ;;  %v3074_v24 = vld [vmem:[%s5009_s10 + $0x8] sm:$0xff] }
 0x307   : > { %v1996_v39 = vmax.f32 %v1889_v25, %v1983_v38  ;;  %4286 = vmatpush3.bf16.msra.mxu1 %v4285_v35  ;;  %4296 = vmatpush3.bf16.msra.mxu0 %v4285_v35 }
 0x308   : > { %4287 = vmatprep.subr.bf16.mxu1 %v4412_v20  ;;  %4297 = vmatprep.subr.bf16.mxu0 %v4412_v20 }
 0x309   : > { %v4288_v41 = vpack.c.bf16 %v1997_v37, %v1996_v39 }
 0x30b   : > { %4290 = vmatpush3.bf16.msk.msra.mxu1 %vm4802_vm8, %v4288_v41  ;;  %4300 = vmatpush3.bf16.msk.msra.mxu0 %vm4802_vm8, %v4288_v41 }
 0x30c   : > { %4301 = vmatprep.subr.bf16.mxu1 %v4412_v20  ;;  %4311 = vmatprep.subr.bf16.mxu0 %v4412_v20 }
 0x30e   : > { %4008 = vmatmul.mubr.msk.f32.vlgmr.msra.gmra.mrb[36].mxu1 %vm1999_vm9, %v1998_v42  ;;  %4023 = vmatmul.mubr.msk.f32.vlgmr.msra.gmra.mrb[50].mxu0 %vm1999_vm9, %v3455_v43 }
 0x30f   : > { %4303 = vmatpush3.bf16.msra.mxu1 %v4793_v30  ;;  %4313 = vmatpush3.bf16.msra.mxu0 %v4793_v30 }
 0x310   : > { %4304 = vmatprep.subr.bf16.mxu1 %v4412_v20  ;;  %4314 = vmatprep.subr.bf16.mxu0 %v4412_v20 }
 0x311   : > { %4037 = vmatprep.mubr.msk.f32.mxu1 %vm4413_vm6, %v4414_v21  ;;  %4052 = vmatprep.mubr.msk.f32.mxu0 %vm4413_vm6, %v4414_v21 }
 0x313   : > { %4306 = vmatpush3.bf16.msra.mxu1 %v4285_v35  ;;  %4316 = vmatpush3.bf16.msra.mxu0 %v4285_v35 }
 0x314   : > { %4307 = vmatprep.subr.bf16.mxu1 %v4412_v20  ;;  %4317 = vmatprep.subr.bf16.mxu0 %v4412_v20 }
 0x317   : > { %4310 = vmatpush3.bf16.msk.msra.mxu1 %vm4802_vm8, %v4288_v41  ;;  %4320 = vmatpush3.bf16.msk.msra.mxu0 %vm4802_vm8, %v4288_v41 }
 0x318   : > { %4321 = vmatprep.subr.bf16.mxu1 %v4412_v20  ;;  %4331 = vmatprep.subr.bf16.mxu0 %v4412_v20 }
 0x31a   : > { %4038 = vmatmul.mubr.msk.f32.vlgmr.msra.gmra.mrb[38].mxu1 %vm1999_vm9, %v3458_v44  ;;  %4053 = vmatmul.mubr.msk.f32.vlgmr.msra.gmra.mrb[52].mxu0 %vm1999_vm9, %v3461_v45 }
 0x31b   : > { %4323 = vmatpush3.bf16.msra.mxu1 %v4793_v30  ;;  %4333 = vmatpush3.bf16.msra.mxu0 %v4793_v30 }
 0x31c   : > { %4324 = vmatprep.subr.bf16.mxu1 %v4412_v20  ;;  %4334 = vmatprep.subr.bf16.mxu0 %v4412_v20 }
 0x31d   : > { %4067 = vmatprep.mubr.msk.f32.mxu1 %vm4413_vm6, %v4414_v21  ;;  %4082 = vmatprep.mubr.msk.f32.mxu0 %vm4413_vm6, %v4414_v21 }
 0x31f   : > { %4326 = vmatpush3.bf16.msra.mxu1 %v4285_v35  ;;  %4336 = vmatpush3.bf16.msra.mxu0 %v4285_v35 }
 0x320   : > { %4327 = vmatprep.subr.bf16.mxu1 %v4412_v20  ;;  %4337 = vmatprep.subr.bf16.mxu0 %v4412_v20 }
 0x323   : > { %4330 = vmatpush3.bf16.msk.msra.mxu1 %vm4802_vm8, %v4288_v41  ;;  %4340 = vmatpush3.bf16.msk.msra.mxu0 %vm4802_vm8, %v4288_v41 }
 0x324   : > { %4341 = vmatprep.subr.bf16.mxu1 %v4412_v20  ;;  %4100 = vmatprep.subr.mxu0 %v4414_v21 }
 0x326   : > { %4068 = vmatmul.mubr.msk.f32.vlgmr.msra.gmra.mrb[40].mxu1 %vm1999_vm9, %v3464_v46  ;;  %4083 = vmatmul.mubr.msk.f32.vlgmr.msra.gmra.mrb[54].mxu0 %vm1999_vm9, %v3467_v47 }
 0x327   : > { %4343 = vmatpush3.bf16.msra.mxu1 %v4793_v30  ;;  %4097 = vmatprep.mubr.msk.f32.mxu1 %vm4413_vm6, %v4414_v21  ;;  %v3079_v30 = vld [vmem:[%s5009_s10 + $0x30] sm:$0xff] }
 0x328   : > { %4344 = vmatprep.subr.bf16.mxu1 %v4412_v20  ;;  %4102 = vmatprep.mubr.msk.f32.mxu0 %vm4413_vm6, %v4414_v21 }
 0x329   : > { %4101 = vmatpush3.msk.msra.mxu0 %vm2539_vm10, %v2534_v49 }
 0x32a   : > { %4105 = vmatprep.subr.mxu0 %v4414_v21 }
 0x32b   : > { %4346 = vmatpush3.bf16.msra.mxu1 %v4285_v35  ;;  %v3084_v35 = vld [vmem:[%s5009_s10 + $0x58] sm:$0xff] }
 0x32c   : > { %4347 = vmatprep.subr.bf16.mxu1 %v4412_v20  ;;  %v3476_v20 = vld [vmem:[%s5005_s6 + $0x2] sm:$0x3] }
 0x32f   : > { %4350 = vmatpush3.bf16.msk.msra.mxu1 %vm4802_vm8, %v4288_v41 }
 0x330   : > { %4110 = vmatprep.subr.mxu1 %v4414_v21 }
 0x332   : > { %4098 = vmatmul.mubr.msk.f32.vlgmr.msra.gmra.mrb[42].mxu1 %vm1999_vm9, %v3470_v48 }
 0x333   : > { %4112 = vmatprep.mubr.msk.f32.mxu1 %vm4413_vm6, %v4414_v21  ;;  %4111 = vmatpush3.msk.msra.mxu1 %vm2539_vm10, %v3476_v20 }
 0x334   : > { %4120 = vmatprep.subr.mxu1 %v4414_v21 }
 0x3e1   : > { %v2073_v50 = vpop.f32.mrb[36].mxu1  ;;  %v2148_v51 = vpop.f32.mrb[50].mxu0 }
 0x3e2   : > { %v4009_v52 = vpop.f32.mrb[37].mxu1  ;;  %v2152_v53 = vmax.f32 %v2073_v50, %v2148_v51  ;;  %v4024_v54 = vpop.f32.mrb[51].mxu0 }
 0x3ed   : > { %v2224_v55 = vpop.f32.mrb[38].mxu1  ;;  %v2300_v56 = vpop.f32.mrb[52].mxu0 }
 0x3ee   : > { %v2228_v57 = vmax.f32 %v2152_v53, %v2224_v55  ;;  %v4039_v58 = vpop.f32.mrb[39].mxu1  ;;  %v4054_v59 = vpop.f32.mrb[53].mxu0 }
 0x3f0   : > { %v2304_v60 = vmax.f32 %v2228_v57, %v2300_v56 }
 0x3f9   : > { %v2376_v61 = vpop.f32.mrb[40].mxu1  ;;  %v2452_v62 = vpop.f32.mrb[54].mxu0 }
 0x3fa   : > { %v2380_v63 = vmax.f32 %v2304_v60, %v2376_v61  ;;  %v4069_v0 = vpop.f32.mrb[41].mxu1  ;;  %v4084_v1 = vpop.f32.mrb[55].mxu0 }
 0x3fc   : > { %v2456_v2 = vmax.f32 %v2380_v63, %v2452_v62 }
 0x405   : > { %v2528_v3 = vpop.f32.mrb[42].mxu1 }
 0x406   : > { %v2532_v4 = vmax.f32 %v2456_v2, %v2528_v3  ;;  %v4099_v5 = vpop.f32.mrb[43].mxu1 }
 0x408   : > { %4103 = vmatmul.mubr.msk.f32.vlgmr.msra.gmra.mrb[56].mxu0 %vm2535_vm11, %v2532_v4  ;;  %4113 = vmatmul.mubr.msk.f32.vlgmr.msra.gmra.mrb[44].mxu1 %vm2535_vm11, %v2532_v4 }
 0x409   : > { %4121 = vmatpush3.msk.msra.mxu1 %vm2539_vm10, %v3481_v6  ;;  %4122 = vmatprep.mubr.msk.f32.mxu1 %vm4413_vm6, %v4414_v21 }
 0x40a   : > { %4107 = vmatprep.mubr.msk.f32.mxu0 %vm4413_vm6, %v4414_v21  ;;  %4130 = vmatprep.subr.mxu1 %v4414_v21 }
 0x40c   : > { %4123 = vmatmul.mubr.msk.f32.vlgmr.msra.gmra.mrb[46].mxu1 %vm2535_vm11, %v2532_v4 }
 0x40d   : > { %4132 = vmatprep.mubr.msk.f32.mxu1 %vm4413_vm6, %v4414_v21  ;;  %4131 = vmatpush3.msk.msra.mxu1 %vm2539_vm10, %v2996_v16 }
 0x4db   : > { %v2609_v8 = vpop.f32.mrb[56].mxu0  ;;  %v2765_v9 = vpop.f32.mrb[44].mxu1 }
 0x4dc   : > { %v4104_v10 = vpop.f32.mrb[57].mxu0  ;;  %4106 = vmatpush3.msra.mxu0 %v2609_v8  ;;  %v4114_v11 = vpop.f32.mrb[45].mxu1 }
 0x4dd   : > { %4108 = vmatmul.mubr.msk.f32.vlgmr.msra.gmra.mrb[58].mxu0 %vm2614_vm12, %v2613_v7  ;;  %4115 = vmatprep.subr.mxu0 %v4414_v21 }
 0x4de   : > { %4116 = vmatpush3.msra.mxu0 %v2765_v9  ;;  %4117 = vmatprep.mubr.msk.f32.mxu0 %vm4413_vm6, %v4414_v21 }
 0x4df   : > { %v2916_v12 = vpop.f32.mrb[46].mxu1  ;;  %4125 = vmatprep.subr.mxu0 %v4414_v21 }
 0x4e0   : > { %v4124_v13 = vpop.f32.mrb[47].mxu1 }
 0x4e5   : > { %4118 = vmatmul.mubr.msk.f32.vlgmr.msra.gmra.mrb[58].mxu0 %vm2614_vm12, %v3479_v14 }
 0x4e6   : > { %4126 = vmatpush3.msra.mxu0 %v2916_v12  ;;  %4127 = vmatprep.mubr.msk.f32.mxu0 %vm4413_vm6, %v4414_v21  ;;  %v3073_v21 = vld [vmem:[%s5009_s10] sm:$0xff] }
 0x4ed   : > { %4128 = vmatmul.mubr.msk.f32.vlgmr.msra.gmra.mrb[58].mxu0 %vm2614_vm12, %v3484_v15 }
 0x4ee   : > { %4137 = vmatprep.mubr.msk.f32.mxu0 %vm2614_vm12, %v3073_v21 }
 0x5c0   : > { %v2991_v18 = vpop.f32.mrb[58].mxu0 }
 0x5c1   : > { %v4371_v19 = vadd.f32 %v2991_v18, %v2691_v17  ;;  %v4129_v22 = vpop.f32.mrb[59].mxu0 }
 0x5c3   : > { %4133 = vmatmul.mubr.msk.f32.vlgmr.msra.gmra.mrb[48].mxu1 %vm2535_vm11, %v4371_v19 }
 0x696   : > { %v3069_v23 = vpop.f32.mrb[48].mxu1 }
 0x697   : > { %v4134_v25 = vpop.f32.mrb[49].mxu1  ;;  %4135 = vmatprep.subr.mxu0 %v3069_v23 }
 0x698   : > { %4136 = vmatpush3.msra.mxu0 %v3069_v23 }
 0x699   : > { %4138 = vmatmul.mubr.msk.f32.vlgmr.msra.gmra.mrb[60].mxu0 %vm2614_vm12, %v3074_v24 }
 0x69a   : > { %4140 = vmatprep.mubr.msk.f32.mxu0 %vm2614_vm12, %v3075_v26 }
 0x69d   : > { %4141 = vmatmul.mubr.msk.f32.gmra.mrb[62].mxu0 %vm2614_vm12, %v3076_v27 }
 0x69e   : > { %4143 = vmatprep.mubr.msk.f32.mxu0 %vm2614_vm12, %v3077_v28 }
 0x6a1   : > { %4144 = vmatmul.mubr.msk.f32.gmra.mrb[64].mxu0 %vm2614_vm12, %v3078_v29 }
 0x6a2   : > { %4146 = vmatprep.mubr.msk.f32.mxu0 %vm2614_vm12, %v3079_v30 }
 0x6a5   : > { %4147 = vmatmul.mubr.msk.f32.gmra.mrb[66].mxu0 %vm2614_vm12, %v3080_v31 }
 0x6a6   : > { %4149 = vmatprep.mubr.msk.f32.mxu0 %vm2614_vm12, %v3081_v32 }
 0x6a9   : > { %4150 = vmatmul.mubr.msk.f32.gmra.mrb[68].mxu0 %vm2614_vm12, %v3082_v33 }
 0x6aa   : > { %4152 = vmatprep.mubr.msk.f32.mxu0 %vm2614_vm12, %v3083_v34 }
 0x6ad   : > { %4153 = vmatmul.mubr.msk.f32.gmra.mrb[70].mxu0 %vm2614_vm12, %v3084_v35 }
 0x76c   : > { %v4139_v36 = vpop.f32.mrb[60].mxu0 }
 0x76d   : > { %3247 = vst.msk [vmem:[%s386_s28 + $0x8] sm:$0xff] %vm408_vm0, %v4139_v36  ;;  %v3187_v37 = vpop.f32.mrb[61].mxu0 }
 0x76e   : > { %3246 = vst.msk [vmem:[%s386_s28] sm:$0xff] %vm408_vm0, %v3187_v37 }
 0x770   : > { %v4142_v38 = vpop.f32.mrb[62].mxu0 }
 0x771   : > { %3249 = vst.msk [vmem:[%s386_s28 + $0x18] sm:$0xff] %vm408_vm0, %v4142_v38  ;;  %v3197_v39 = vpop.f32.mrb[63].mxu0 }
 0x772   : > { %3248 = vst.msk [vmem:[%s386_s28 + $0x10] sm:$0xff] %vm408_vm0, %v3197_v39 }
 0x774   : > { %v4145_v40 = vpop.f32.mrb[64].mxu0 }
 0x775   : > { %3251 = vst.msk [vmem:[%s386_s28 + $0x28] sm:$0xff] %vm408_vm0, %v4145_v40  ;;  %v3207_v41 = vpop.f32.mrb[65].mxu0 }
 0x776   : > { %3250 = vst.msk [vmem:[%s386_s28 + $0x20] sm:$0xff] %vm408_vm0, %v3207_v41 }
 0x778   : > { %v4148_v42 = vpop.f32.mrb[66].mxu0 }
 0x779   : > { %3253 = vst.msk [vmem:[%s386_s28 + $0x38] sm:$0xff] %vm408_vm0, %v4148_v42  ;;  %v3217_v43 = vpop.f32.mrb[67].mxu0 }
 0x77a   : > { %3252 = vst.msk [vmem:[%s386_s28 + $0x30] sm:$0xff] %vm408_vm0, %v3217_v43 }
 0x77c   : > { %v4151_v44 = vpop.f32.mrb[68].mxu0 }
 0x77d   : > { %3255 = vst.msk [vmem:[%s386_s28 + $0x48] sm:$0xff] %vm408_vm0, %v4151_v44  ;;  %v3227_v45 = vpop.f32.mrb[69].mxu0 }
 0x77e   : > { %3254 = vst.msk [vmem:[%s386_s28 + $0x40] sm:$0xff] %vm408_vm0, %v3227_v45 }
 0x780   : > { %v4154_v46 = vpop.f32.mrb[70].mxu0 }
 0x781   : > { %3257 = vst.msk [vmem:[%s386_s28 + $0x58] sm:$0xff] %vm408_vm0, %v4154_v46  ;;  %v3237_v47 = vpop.f32.mrb[71].mxu0 }
 0x782   : > { %3256 = vst.msk [vmem:[%s386_s28 + $0x50] sm:$0xff] %vm408_vm0, %v3237_v47 }
 0x783 PF: > { %s21_s17 = sadd.s32 1, %s4408_s17  }
 0x784   : > { %p18_p4 = scmp.ge.s32.totalorder %s21_s17, 4  }
 0x786   :  { %20 = sbr.rel (!%p18_p4) target bundleno = 1 (0x1), region = 114 }

</bundles_post_ra>
